<compile_context>
chip_gen: v5e
topology: v5e:2x2
jax: 0.10.0
libtpu: 0.0.40
codegen_flags: <defaults>
</compile_context>

<pallas_src>
import jax
import jax.numpy as jnp
from jax.experimental import pallas as pl
from jax.experimental.pallas import tpu as pltpu  # noqa: F401  (TPU backend)


# ----------------------------------------------------------------------------
# LSTM recurrence over precomputed gate inputs (PyTorch gate order i, f, g, o;
# c' = f*c + i*g; h' = o*tanh(c')).  Runs entirely on values inside the kernel.
# ----------------------------------------------------------------------------
def _lstm_recurrence(gx_tm, whh, B, T, H):
    """gx_tm: (T*B, 4H) time-major x@W_ih + (b_ih+b_hh), row index = t*B + b.
    whh: (H, 4H) recurrent weights (stored transposed).
    Returns list of per-step hidden states [(B, H)] * T.
    Loop is fully unrolled at trace time; only h@W_hh + gate math is on the
    serial critical path (the input projection was hoisted by the caller)."""
    h = jnp.zeros((B, H), jnp.float32)
    c = jnp.zeros((B, H), jnp.float32)
    hs = []
    for t in range(T):
        g = gx_tm[t * B:(t + 1) * B, :] + jnp.dot(
            h, whh, preferred_element_type=jnp.float32)           # (B, 4H)
        i_g = jax.nn.sigmoid(g[:, 0:H])
        f_g = jax.nn.sigmoid(g[:, H:2 * H])
        g_g = jnp.tanh(g[:, 2 * H:3 * H])
        o_g = jax.nn.sigmoid(g[:, 3 * H:4 * H])
        c = f_g * c + i_g * g_g
        h = o_g * jnp.tanh(c)
        hs.append(h)
    return hs


# ----------------------------------------------------------------------------
# Single fused kernel: LSTM1 -> LSTM2 -> MLP head, one VMEM-resident pass.
# ----------------------------------------------------------------------------
def _fused_rnn_kernel(x_ref, wih1_ref, whh1_ref, b1_ref,
                      wih2_ref, whh2_ref, b2_ref,
                      wf1_ref, bf1_ref, wf2_ref, bf2_ref, wf3_ref, bf3_ref,
                      o_ref):
    B, T, _ = x_ref.shape
    H1 = whh1_ref.shape[0]
    H2 = whh2_ref.shape[0]

    # Batch-first (B, T, F) -> time-major (T*B, F) slab via static slices
    # (replaces the old materialized XLA transpose around the kernel).
    x = x_ref[...]
    x_tm = jnp.concatenate([x[:, t, :] for t in range(T)], axis=0)

    # LSTM layer 1 — input projection hoisted out of the recurrence.
    gx1 = (jnp.dot(x_tm, wih1_ref[...], preferred_element_type=jnp.float32)
           + b1_ref[...])                                         # (T*B, 4H1)
    hs1 = _lstm_recurrence(gx1, whh1_ref[...], B, T, H1)

    # LSTM layer 2 — fed by layer-1 hidden states, projection hoisted too.
    hs1_tm = jnp.concatenate(hs1, axis=0)                         # (T*B, H1)
    gx2 = (jnp.dot(hs1_tm, wih2_ref[...], preferred_element_type=jnp.float32)
           + b2_ref[...])                                         # (T*B, 4H2)
    hs2 = _lstm_recurrence(gx2, whh2_ref[...], B, T, H2)

    # MLP head epilogue on the resident hs2 slab (dropouts are identity).
    hs2_tm = jnp.concatenate(hs2, axis=0)                         # (T*B, H2)
    z = jnp.dot(hs2_tm, wf1_ref[...], preferred_element_type=jnp.float32)
    z = jnp.maximum(z + bf1_ref[...], 0.0)
    z = jnp.dot(z, wf2_ref[...], preferred_element_type=jnp.float32)
    z = jnp.maximum(z + bf2_ref[...], 0.0)
    y = (jnp.dot(z, wf3_ref[...], preferred_element_type=jnp.float32)
         + bf3_ref[...])                                          # (T*B, out)

    # Time-major rows (t*B + b) -> batch-first (B, T, out) output.
    for b in range(B):
        rows = [y[t * B + b:t * B + b + 1, :] for t in range(T)]
        o_ref[b] = jnp.concatenate(rows, axis=0)                  # (T, out)


def rnn_forward(params, x_bti):
    """x_bti: (B, T, input_size) batch-first -> (B, T, output_size)."""
    B, T, _ = x_bti.shape
    out_size = params["w_fc3_t"].shape[1]
    return pl.pallas_call(
        _fused_rnn_kernel,
        out_shape=jax.ShapeDtypeStruct((B, T, out_size), jnp.float32),
    )(x_bti,
      params["wih1_t"], params["whh1_t"], params["b1"],
      params["wih2_t"], params["whh2_t"], params["b2"],
      params["w_fc1_t"], params["b_fc1"],
      params["w_fc2_t"], params["b_fc2"],
      params["w_fc3_t"], params["b_fc3"])


# ----------------------------------------------------------------------------
# Parameter construction (deterministic, PyTorch-style uniform init).
# ----------------------------------------------------------------------------
def _uniform(key, shape, bound):
    return jax.random.uniform(key, shape, jnp.float32, -bound, bound)


def init_rnn_params(key, input_size, hidden_size=32, output_size=1):
    H1 = hidden_size
    H2 = hidden_size // 2
    fc1_in = H2                       # is_attention=False
    fc1_out = hidden_size // 4
    fc2_out = hidden_size // 10

    keys = jax.random.split(key, 14)
    k = iter(keys)
    p = {}

    # LSTM1: input_size -> H1  (weights stored transposed: (in, 4H))
    s1 = 1.0 / jnp.sqrt(H1)
    p["wih1_t"] = _uniform(next(k), (input_size, 4 * H1), s1)
    p["whh1_t"] = _uniform(next(k), (H1, 4 * H1), s1)
    p["b1"] = (_uniform(next(k), (1, 4 * H1), s1)
               + _uniform(next(k), (1, 4 * H1), s1))            # b_ih + b_hh

    # LSTM2: H1 -> H2
    s2 = 1.0 / jnp.sqrt(H2)
    p["wih2_t"] = _uniform(next(k), (H1, 4 * H2), s2)
    p["whh2_t"] = _uniform(next(k), (H2, 4 * H2), s2)
    p["b2"] = (_uniform(next(k), (1, 4 * H2), s2)
               + _uniform(next(k), (1, 4 * H2), s2))

    # fc1 / fc2 / fc3 (stored transposed: (in, out))
    sf1 = 1.0 / jnp.sqrt(fc1_in)
    p["w_fc1_t"] = _uniform(next(k), (fc1_in, fc1_out), sf1)
    p["b_fc1"] = _uniform(next(k), (1, fc1_out), sf1)
    sf2 = 1.0 / jnp.sqrt(fc1_out)
    p["w_fc2_t"] = _uniform(next(k), (fc1_out, fc2_out), sf2)
    p["b_fc2"] = _uniform(next(k), (1, fc2_out), sf2)
    sf3 = 1.0 / jnp.sqrt(fc2_out)
    p["w_fc3_t"] = _uniform(next(k), (fc2_out, output_size), sf3)
    p["b_fc3"] = _uniform(next(k), (1, output_size), sf3)
    return p


if __name__ == "__main__":
    key = jax.random.PRNGKey(0)
    k_param, k_x = jax.random.split(key)

    B, T, INPUT_SIZE, HIDDEN = 2, 8, 4, 32
    params = init_rnn_params(k_param, INPUT_SIZE, hidden_size=HIDDEN,
                             output_size=1)
    x = jax.random.normal(k_x, (B, T, INPUT_SIZE), jnp.float32)

    out = rnn_forward(params, x)
    jax.block_until_ready(out)
    assert out.shape == (B, T, 1)
    assert bool(jnp.all(jnp.isfinite(out)))
    print("KERNEL_OK")
</pallas_src>

<mosaic_0001>
module attributes {stable_mosaic.version = 11 : i64} {
  func.func @_fused_rnn_kernel(%arg0: memref<2x8x4xf32, #tpu.memory_space<vmem>>, %arg1: memref<4x128xf32, #tpu.memory_space<vmem>>, %arg2: memref<32x128xf32, #tpu.memory_space<vmem>>, %arg3: memref<1x128xf32, #tpu.memory_space<vmem>>, %arg4: memref<32x64xf32, #tpu.memory_space<vmem>>, %arg5: memref<16x64xf32, #tpu.memory_space<vmem>>, %arg6: memref<1x64xf32, #tpu.memory_space<vmem>>, %arg7: memref<16x8xf32, #tpu.memory_space<vmem>>, %arg8: memref<1x8xf32, #tpu.memory_space<vmem>>, %arg9: memref<8x3xf32, #tpu.memory_space<vmem>>, %arg10: memref<1x3xf32, #tpu.memory_space<vmem>>, %arg11: memref<3x1xf32, #tpu.memory_space<vmem>>, %arg12: memref<1x1xf32, #tpu.memory_space<vmem>>, %arg13: memref<2x8x1xf32, #tpu.memory_space<vmem>>) attributes {dimension_semantics = [], scalar_prefetch = 0 : i64, scratch_operands = 0 : i64, tpu.core_type = #tpu.core_type<tc>} {
    %c0 = arith.constant 0 : index
    %c0_0 = arith.constant 0 : index
    %c0_1 = arith.constant 0 : index
    %0 = vector.load %arg0[%c0, %c0_0, %c0_1] : memref<2x8x4xf32, #tpu.memory_space<vmem>>, vector<2x8x4xf32>
    %1 = vector.extract_strided_slice %0 {offsets = [0, 0, 0], sizes = [2, 1, 4], strides = [1, 1, 1]} : vector<2x8x4xf32> to vector<2x1x4xf32>
    %2 = vector.shape_cast %1 : vector<2x1x4xf32> to vector<2x4xf32>
    %3 = vector.extract_strided_slice %0 {offsets = [0, 1, 0], sizes = [2, 1, 4], strides = [1, 1, 1]} : vector<2x8x4xf32> to vector<2x1x4xf32>
    %4 = vector.shape_cast %3 : vector<2x1x4xf32> to vector<2x4xf32>
    %5 = vector.extract_strided_slice %0 {offsets = [0, 2, 0], sizes = [2, 1, 4], strides = [1, 1, 1]} : vector<2x8x4xf32> to vector<2x1x4xf32>
    %6 = vector.shape_cast %5 : vector<2x1x4xf32> to vector<2x4xf32>
    %7 = vector.extract_strided_slice %0 {offsets = [0, 3, 0], sizes = [2, 1, 4], strides = [1, 1, 1]} : vector<2x8x4xf32> to vector<2x1x4xf32>
    %8 = vector.shape_cast %7 : vector<2x1x4xf32> to vector<2x4xf32>
    %9 = vector.extract_strided_slice %0 {offsets = [0, 4, 0], sizes = [2, 1, 4], strides = [1, 1, 1]} : vector<2x8x4xf32> to vector<2x1x4xf32>
    %10 = vector.shape_cast %9 : vector<2x1x4xf32> to vector<2x4xf32>
    %11 = vector.extract_strided_slice %0 {offsets = [0, 5, 0], sizes = [2, 1, 4], strides = [1, 1, 1]} : vector<2x8x4xf32> to vector<2x1x4xf32>
    %12 = vector.shape_cast %11 : vector<2x1x4xf32> to vector<2x4xf32>
    %13 = vector.extract_strided_slice %0 {offsets = [0, 6, 0], sizes = [2, 1, 4], strides = [1, 1, 1]} : vector<2x8x4xf32> to vector<2x1x4xf32>
    %14 = vector.shape_cast %13 : vector<2x1x4xf32> to vector<2x4xf32>
    %15 = vector.extract_strided_slice %0 {offsets = [0, 7, 0], sizes = [2, 1, 4], strides = [1, 1, 1]} : vector<2x8x4xf32> to vector<2x1x4xf32>
    %16 = vector.shape_cast %15 : vector<2x1x4xf32> to vector<2x4xf32>
    %17 = tpu.concatenate %2, %4, %6, %8, %10, %12, %14, %16 in 0 : vector<2x4xf32>, vector<2x4xf32>, vector<2x4xf32>, vector<2x4xf32>, vector<2x4xf32>, vector<2x4xf32>, vector<2x4xf32>, vector<2x4xf32> -> vector<16x4xf32>
    %c0_2 = arith.constant 0 : index
    %c0_3 = arith.constant 0 : index
    %18 = vector.load %arg1[%c0_2, %c0_3] : memref<4x128xf32, #tpu.memory_space<vmem>>, vector<4x128xf32>
    %cst = arith.constant dense<0.000000e+00> : vector<16x128xf32>
    %19 = tpu.matmul %17, %18, %cst {dimension_numbers = #tpu.dot_dimension_numbers<[1], [0], [0], [1], [0, 0, 1, 1], [], []>} : vector<16x4xf32>, vector<4x128xf32>, vector<16x128xf32> -> vector<16x128xf32>
    %c0_4 = arith.constant 0 : index
    %c0_5 = arith.constant 0 : index
    %20 = vector.load %arg3[%c0_4, %c0_5] : memref<1x128xf32, #tpu.memory_space<vmem>>, vector<1x128xf32>
    %21 = vector.broadcast %20 : vector<1x128xf32> to vector<16x128xf32>
    %22 = arith.addf %19, %21 : vector<16x128xf32>
    %c0_6 = arith.constant 0 : index
    %c0_7 = arith.constant 0 : index
    %23 = vector.load %arg2[%c0_6, %c0_7] : memref<32x128xf32, #tpu.memory_space<vmem>>, vector<32x128xf32>
    %cst_8 = arith.constant 0.000000e+00 : f32
    %24 = vector.broadcast %cst_8 : f32 to vector<2x32xf32>
    %cst_9 = arith.constant 0.000000e+00 : f32
    %25 = vector.broadcast %cst_9 : f32 to vector<2x32xf32>
    %26 = vector.extract_strided_slice %22 {offsets = [0, 0], sizes = [2, 128], strides = [1, 1]} : vector<16x128xf32> to vector<2x128xf32>
    %cst_10 = arith.constant dense<0.000000e+00> : vector<2x128xf32>
    %27 = tpu.matmul %24, %23, %cst_10 {dimension_numbers = #tpu.dot_dimension_numbers<[1], [0], [0], [1], [0, 0, 1, 1], [], []>} : vector<2x32xf32>, vector<32x128xf32>, vector<2x128xf32> -> vector<2x128xf32>
    %28 = arith.addf %26, %27 : vector<2x128xf32>
    %29 = vector.extract_strided_slice %28 {offsets = [0, 0], sizes = [2, 32], strides = [1, 1]} : vector<2x128xf32> to vector<2x32xf32>
    %30 = arith.negf %29 : vector<2x32xf32>
    %31 = math.exp %30 : vector<2x32xf32>
    %cst_11 = arith.constant 1.000000e+00 : f32
    %32 = vector.broadcast %cst_11 : f32 to vector<2x32xf32>
    %33 = arith.addf %32, %31 : vector<2x32xf32>
    %34 = arith.divf %32, %33 : vector<2x32xf32>
    %35 = vector.extract_strided_slice %28 {offsets = [0, 32], sizes = [2, 32], strides = [1, 1]} : vector<2x128xf32> to vector<2x32xf32>
    %36 = arith.negf %35 : vector<2x32xf32>
    %37 = math.exp %36 : vector<2x32xf32>
    %cst_12 = arith.constant 1.000000e+00 : f32
    %38 = vector.broadcast %cst_12 : f32 to vector<2x32xf32>
    %39 = arith.addf %38, %37 : vector<2x32xf32>
    %40 = arith.divf %38, %39 : vector<2x32xf32>
    %41 = vector.extract_strided_slice %28 {offsets = [0, 64], sizes = [2, 32], strides = [1, 1]} : vector<2x128xf32> to vector<2x32xf32>
    %42 = math.tanh %41 : vector<2x32xf32>
    %43 = vector.extract_strided_slice %28 {offsets = [0, 96], sizes = [2, 32], strides = [1, 1]} : vector<2x128xf32> to vector<2x32xf32>
    %44 = arith.negf %43 : vector<2x32xf32>
    %45 = math.exp %44 : vector<2x32xf32>
    %cst_13 = arith.constant 1.000000e+00 : f32
    %46 = vector.broadcast %cst_13 : f32 to vector<2x32xf32>
    %47 = arith.addf %46, %45 : vector<2x32xf32>
    %48 = arith.divf %46, %47 : vector<2x32xf32>
    %49 = arith.mulf %40, %25 : vector<2x32xf32>
    %50 = arith.mulf %34, %42 : vector<2x32xf32>
    %51 = arith.addf %49, %50 : vector<2x32xf32>
    %52 = math.tanh %51 : vector<2x32xf32>
    %53 = arith.mulf %48, %52 : vector<2x32xf32>
    %54 = vector.extract_strided_slice %22 {offsets = [2, 0], sizes = [2, 128], strides = [1, 1]} : vector<16x128xf32> to vector<2x128xf32>
    %cst_14 = arith.constant dense<0.000000e+00> : vector<2x128xf32>
    %55 = tpu.matmul %53, %23, %cst_14 {dimension_numbers = #tpu.dot_dimension_numbers<[1], [0], [0], [1], [0, 0, 1, 1], [], []>} : vector<2x32xf32>, vector<32x128xf32>, vector<2x128xf32> -> vector<2x128xf32>
    %56 = arith.addf %54, %55 : vector<2x128xf32>
    %57 = vector.extract_strided_slice %56 {offsets = [0, 0], sizes = [2, 32], strides = [1, 1]} : vector<2x128xf32> to vector<2x32xf32>
    %58 = arith.negf %57 : vector<2x32xf32>
    %59 = math.exp %58 : vector<2x32xf32>
    %cst_15 = arith.constant 1.000000e+00 : f32
    %60 = vector.broadcast %cst_15 : f32 to vector<2x32xf32>
    %61 = arith.addf %60, %59 : vector<2x32xf32>
    %62 = arith.divf %60, %61 : vector<2x32xf32>
    %63 = vector.extract_strided_slice %56 {offsets = [0, 32], sizes = [2, 32], strides = [1, 1]} : vector<2x128xf32> to vector<2x32xf32>
    %64 = arith.negf %63 : vector<2x32xf32>
    %65 = math.exp %64 : vector<2x32xf32>
    %cst_16 = arith.constant 1.000000e+00 : f32
    %66 = vector.broadcast %cst_16 : f32 to vector<2x32xf32>
    %67 = arith.addf %66, %65 : vector<2x32xf32>
    %68 = arith.divf %66, %67 : vector<2x32xf32>
    %69 = vector.extract_strided_slice %56 {offsets = [0, 64], sizes = [2, 32], strides = [1, 1]} : vector<2x128xf32> to vector<2x32xf32>
    %70 = math.tanh %69 : vector<2x32xf32>
    %71 = vector.extract_strided_slice %56 {offsets = [0, 96], sizes = [2, 32], strides = [1, 1]} : vector<2x128xf32> to vector<2x32xf32>
    %72 = arith.negf %71 : vector<2x32xf32>
    %73 = math.exp %72 : vector<2x32xf32>
    %cst_17 = arith.constant 1.000000e+00 : f32
    %74 = vector.broadcast %cst_17 : f32 to vector<2x32xf32>
    %75 = arith.addf %74, %73 : vector<2x32xf32>
    %76 = arith.divf %74, %75 : vector<2x32xf32>
    %77 = arith.mulf %68, %51 : vector<2x32xf32>
    %78 = arith.mulf %62, %70 : vector<2x32xf32>
    %79 = arith.addf %77, %78 : vector<2x32xf32>
    %80 = math.tanh %79 : vector<2x32xf32>
    %81 = arith.mulf %76, %80 : vector<2x32xf32>
    %82 = vector.extract_strided_slice %22 {offsets = [4, 0], sizes = [2, 128], strides = [1, 1]} : vector<16x128xf32> to vector<2x128xf32>
    %cst_18 = arith.constant dense<0.000000e+00> : vector<2x128xf32>
    %83 = tpu.matmul %81, %23, %cst_18 {dimension_numbers = #tpu.dot_dimension_numbers<[1], [0], [0], [1], [0, 0, 1, 1], [], []>} : vector<2x32xf32>, vector<32x128xf32>, vector<2x128xf32> -> vector<2x128xf32>
    %84 = arith.addf %82, %83 : vector<2x128xf32>
    %85 = vector.extract_strided_slice %84 {offsets = [0, 0], sizes = [2, 32], strides = [1, 1]} : vector<2x128xf32> to vector<2x32xf32>
    %86 = arith.negf %85 : vector<2x32xf32>
    %87 = math.exp %86 : vector<2x32xf32>
    %cst_19 = arith.constant 1.000000e+00 : f32
    %88 = vector.broadcast %cst_19 : f32 to vector<2x32xf32>
    %89 = arith.addf %88, %87 : vector<2x32xf32>
    %90 = arith.divf %88, %89 : vector<2x32xf32>
    %91 = vector.extract_strided_slice %84 {offsets = [0, 32], sizes = [2, 32], strides = [1, 1]} : vector<2x128xf32> to vector<2x32xf32>
    %92 = arith.negf %91 : vector<2x32xf32>
    %93 = math.exp %92 : vector<2x32xf32>
    %cst_20 = arith.constant 1.000000e+00 : f32
    %94 = vector.broadcast %cst_20 : f32 to vector<2x32xf32>
    %95 = arith.addf %94, %93 : vector<2x32xf32>
    %96 = arith.divf %94, %95 : vector<2x32xf32>
    %97 = vector.extract_strided_slice %84 {offsets = [0, 64], sizes = [2, 32], strides = [1, 1]} : vector<2x128xf32> to vector<2x32xf32>
    %98 = math.tanh %97 : vector<2x32xf32>
    %99 = vector.extract_strided_slice %84 {offsets = [0, 96], sizes = [2, 32], strides = [1, 1]} : vector<2x128xf32> to vector<2x32xf32>
    %100 = arith.negf %99 : vector<2x32xf32>
    %101 = math.exp %100 : vector<2x32xf32>
    %cst_21 = arith.constant 1.000000e+00 : f32
    %102 = vector.broadcast %cst_21 : f32 to vector<2x32xf32>
    %103 = arith.addf %102, %101 : vector<2x32xf32>
    %104 = arith.divf %102, %103 : vector<2x32xf32>
    %105 = arith.mulf %96, %79 : vector<2x32xf32>
    %106 = arith.mulf %90, %98 : vector<2x32xf32>
    %107 = arith.addf %105, %106 : vector<2x32xf32>
    %108 = math.tanh %107 : vector<2x32xf32>
    %109 = arith.mulf %104, %108 : vector<2x32xf32>
    %110 = vector.extract_strided_slice %22 {offsets = [6, 0], sizes = [2, 128], strides = [1, 1]} : vector<16x128xf32> to vector<2x128xf32>
    %cst_22 = arith.constant dense<0.000000e+00> : vector<2x128xf32>
    %111 = tpu.matmul %109, %23, %cst_22 {dimension_numbers = #tpu.dot_dimension_numbers<[1], [0], [0], [1], [0, 0, 1, 1], [], []>} : vector<2x32xf32>, vector<32x128xf32>, vector<2x128xf32> -> vector<2x128xf32>
    %112 = arith.addf %110, %111 : vector<2x128xf32>
    %113 = vector.extract_strided_slice %112 {offsets = [0, 0], sizes = [2, 32], strides = [1, 1]} : vector<2x128xf32> to vector<2x32xf32>
    %114 = arith.negf %113 : vector<2x32xf32>
    %115 = math.exp %114 : vector<2x32xf32>
    %cst_23 = arith.constant 1.000000e+00 : f32
    %116 = vector.broadcast %cst_23 : f32 to vector<2x32xf32>
    %117 = arith.addf %116, %115 : vector<2x32xf32>
    %118 = arith.divf %116, %117 : vector<2x32xf32>
    %119 = vector.extract_strided_slice %112 {offsets = [0, 32], sizes = [2, 32], strides = [1, 1]} : vector<2x128xf32> to vector<2x32xf32>
    %120 = arith.negf %119 : vector<2x32xf32>
    %121 = math.exp %120 : vector<2x32xf32>
    %cst_24 = arith.constant 1.000000e+00 : f32
    %122 = vector.broadcast %cst_24 : f32 to vector<2x32xf32>
    %123 = arith.addf %122, %121 : vector<2x32xf32>
    %124 = arith.divf %122, %123 : vector<2x32xf32>
    %125 = vector.extract_strided_slice %112 {offsets = [0, 64], sizes = [2, 32], strides = [1, 1]} : vector<2x128xf32> to vector<2x32xf32>
    %126 = math.tanh %125 : vector<2x32xf32>
    %127 = vector.extract_strided_slice %112 {offsets = [0, 96], sizes = [2, 32], strides = [1, 1]} : vector<2x128xf32> to vector<2x32xf32>
    %128 = arith.negf %127 : vector<2x32xf32>
    %129 = math.exp %128 : vector<2x32xf32>
    %cst_25 = arith.constant 1.000000e+00 : f32
    %130 = vector.broadcast %cst_25 : f32 to vector<2x32xf32>
    %131 = arith.addf %130, %129 : vector<2x32xf32>
    %132 = arith.divf %130, %131 : vector<2x32xf32>
    %133 = arith.mulf %124, %107 : vector<2x32xf32>
    %134 = arith.mulf %118, %126 : vector<2x32xf32>
    %135 = arith.addf %133, %134 : vector<2x32xf32>
    %136 = math.tanh %135 : vector<2x32xf32>
    %137 = arith.mulf %132, %136 : vector<2x32xf32>
    %138 = vector.extract_strided_slice %22 {offsets = [8, 0], sizes = [2, 128], strides = [1, 1]} : vector<16x128xf32> to vector<2x128xf32>
    %cst_26 = arith.constant dense<0.000000e+00> : vector<2x128xf32>
    %139 = tpu.matmul %137, %23, %cst_26 {dimension_numbers = #tpu.dot_dimension_numbers<[1], [0], [0], [1], [0, 0, 1, 1], [], []>} : vector<2x32xf32>, vector<32x128xf32>, vector<2x128xf32> -> vector<2x128xf32>
    %140 = arith.addf %138, %139 : vector<2x128xf32>
    %141 = vector.extract_strided_slice %140 {offsets = [0, 0], sizes = [2, 32], strides = [1, 1]} : vector<2x128xf32> to vector<2x32xf32>
    %142 = arith.negf %141 : vector<2x32xf32>
    %143 = math.exp %142 : vector<2x32xf32>
    %cst_27 = arith.constant 1.000000e+00 : f32
    %144 = vector.broadcast %cst_27 : f32 to vector<2x32xf32>
    %145 = arith.addf %144, %143 : vector<2x32xf32>
    %146 = arith.divf %144, %145 : vector<2x32xf32>
    %147 = vector.extract_strided_slice %140 {offsets = [0, 32], sizes = [2, 32], strides = [1, 1]} : vector<2x128xf32> to vector<2x32xf32>
    %148 = arith.negf %147 : vector<2x32xf32>
    %149 = math.exp %148 : vector<2x32xf32>
    %cst_28 = arith.constant 1.000000e+00 : f32
    %150 = vector.broadcast %cst_28 : f32 to vector<2x32xf32>
    %151 = arith.addf %150, %149 : vector<2x32xf32>
    %152 = arith.divf %150, %151 : vector<2x32xf32>
    %153 = vector.extract_strided_slice %140 {offsets = [0, 64], sizes = [2, 32], strides = [1, 1]} : vector<2x128xf32> to vector<2x32xf32>
    %154 = math.tanh %153 : vector<2x32xf32>
    %155 = vector.extract_strided_slice %140 {offsets = [0, 96], sizes = [2, 32], strides = [1, 1]} : vector<2x128xf32> to vector<2x32xf32>
    %156 = arith.negf %155 : vector<2x32xf32>
    %157 = math.exp %156 : vector<2x32xf32>
    %cst_29 = arith.constant 1.000000e+00 : f32
    %158 = vector.broadcast %cst_29 : f32 to vector<2x32xf32>
    %159 = arith.addf %158, %157 : vector<2x32xf32>
    %160 = arith.divf %158, %159 : vector<2x32xf32>
    %161 = arith.mulf %152, %135 : vector<2x32xf32>
    %162 = arith.mulf %146, %154 : vector<2x32xf32>
    %163 = arith.addf %161, %162 : vector<2x32xf32>
    %164 = math.tanh %163 : vector<2x32xf32>
    %165 = arith.mulf %160, %164 : vector<2x32xf32>
    %166 = vector.extract_strided_slice %22 {offsets = [10, 0], sizes = [2, 128], strides = [1, 1]} : vector<16x128xf32> to vector<2x128xf32>
    %cst_30 = arith.constant dense<0.000000e+00> : vector<2x128xf32>
    %167 = tpu.matmul %165, %23, %cst_30 {dimension_numbers = #tpu.dot_dimension_numbers<[1], [0], [0], [1], [0, 0, 1, 1], [], []>} : vector<2x32xf32>, vector<32x128xf32>, vector<2x128xf32> -> vector<2x128xf32>
    %168 = arith.addf %166, %167 : vector<2x128xf32>
    %169 = vector.extract_strided_slice %168 {offsets = [0, 0], sizes = [2, 32], strides = [1, 1]} : vector<2x128xf32> to vector<2x32xf32>
    %170 = arith.negf %169 : vector<2x32xf32>
    %171 = math.exp %170 : vector<2x32xf32>
    %cst_31 = arith.constant 1.000000e+00 : f32
    %172 = vector.broadcast %cst_31 : f32 to vector<2x32xf32>
    %173 = arith.addf %172, %171 : vector<2x32xf32>
    %174 = arith.divf %172, %173 : vector<2x32xf32>
    %175 = vector.extract_strided_slice %168 {offsets = [0, 32], sizes = [2, 32], strides = [1, 1]} : vector<2x128xf32> to vector<2x32xf32>
    %176 = arith.negf %175 : vector<2x32xf32>
    %177 = math.exp %176 : vector<2x32xf32>
    %cst_32 = arith.constant 1.000000e+00 : f32
    %178 = vector.broadcast %cst_32 : f32 to vector<2x32xf32>
    %179 = arith.addf %178, %177 : vector<2x32xf32>
    %180 = arith.divf %178, %179 : vector<2x32xf32>
    %181 = vector.extract_strided_slice %168 {offsets = [0, 64], sizes = [2, 32], strides = [1, 1]} : vector<2x128xf32> to vector<2x32xf32>
    %182 = math.tanh %181 : vector<2x32xf32>
    %183 = vector.extract_strided_slice %168 {offsets = [0, 96], sizes = [2, 32], strides = [1, 1]} : vector<2x128xf32> to vector<2x32xf32>
    %184 = arith.negf %183 : vector<2x32xf32>
    %185 = math.exp %184 : vector<2x32xf32>
    %cst_33 = arith.constant 1.000000e+00 : f32
    %186 = vector.broadcast %cst_33 : f32 to vector<2x32xf32>
    %187 = arith.addf %186, %185 : vector<2x32xf32>
    %188 = arith.divf %186, %187 : vector<2x32xf32>
    %189 = arith.mulf %180, %163 : vector<2x32xf32>
    %190 = arith.mulf %174, %182 : vector<2x32xf32>
    %191 = arith.addf %189, %190 : vector<2x32xf32>
    %192 = math.tanh %191 : vector<2x32xf32>
    %193 = arith.mulf %188, %192 : vector<2x32xf32>
    %194 = vector.extract_strided_slice %22 {offsets = [12, 0], sizes = [2, 128], strides = [1, 1]} : vector<16x128xf32> to vector<2x128xf32>
    %cst_34 = arith.constant dense<0.000000e+00> : vector<2x128xf32>
    %195 = tpu.matmul %193, %23, %cst_34 {dimension_numbers = #tpu.dot_dimension_numbers<[1], [0], [0], [1], [0, 0, 1, 1], [], []>} : vector<2x32xf32>, vector<32x128xf32>, vector<2x128xf32> -> vector<2x128xf32>
    %196 = arith.addf %194, %195 : vector<2x128xf32>
    %197 = vector.extract_strided_slice %196 {offsets = [0, 0], sizes = [2, 32], strides = [1, 1]} : vector<2x128xf32> to vector<2x32xf32>
    %198 = arith.negf %197 : vector<2x32xf32>
    %199 = math.exp %198 : vector<2x32xf32>
    %cst_35 = arith.constant 1.000000e+00 : f32
    %200 = vector.broadcast %cst_35 : f32 to vector<2x32xf32>
    %201 = arith.addf %200, %199 : vector<2x32xf32>
    %202 = arith.divf %200, %201 : vector<2x32xf32>
    %203 = vector.extract_strided_slice %196 {offsets = [0, 32], sizes = [2, 32], strides = [1, 1]} : vector<2x128xf32> to vector<2x32xf32>
    %204 = arith.negf %203 : vector<2x32xf32>
    %205 = math.exp %204 : vector<2x32xf32>
    %cst_36 = arith.constant 1.000000e+00 : f32
    %206 = vector.broadcast %cst_36 : f32 to vector<2x32xf32>
    %207 = arith.addf %206, %205 : vector<2x32xf32>
    %208 = arith.divf %206, %207 : vector<2x32xf32>
    %209 = vector.extract_strided_slice %196 {offsets = [0, 64], sizes = [2, 32], strides = [1, 1]} : vector<2x128xf32> to vector<2x32xf32>
    %210 = math.tanh %209 : vector<2x32xf32>
    %211 = vector.extract_strided_slice %196 {offsets = [0, 96], sizes = [2, 32], strides = [1, 1]} : vector<2x128xf32> to vector<2x32xf32>
    %212 = arith.negf %211 : vector<2x32xf32>
    %213 = math.exp %212 : vector<2x32xf32>
    %cst_37 = arith.constant 1.000000e+00 : f32
    %214 = vector.broadcast %cst_37 : f32 to vector<2x32xf32>
    %215 = arith.addf %214, %213 : vector<2x32xf32>
    %216 = arith.divf %214, %215 : vector<2x32xf32>
    %217 = arith.mulf %208, %191 : vector<2x32xf32>
    %218 = arith.mulf %202, %210 : vector<2x32xf32>
    %219 = arith.addf %217, %218 : vector<2x32xf32>
    %220 = math.tanh %219 : vector<2x32xf32>
    %221 = arith.mulf %216, %220 : vector<2x32xf32>
    %222 = vector.extract_strided_slice %22 {offsets = [14, 0], sizes = [2, 128], strides = [1, 1]} : vector<16x128xf32> to vector<2x128xf32>
    %cst_38 = arith.constant dense<0.000000e+00> : vector<2x128xf32>
    %223 = tpu.matmul %221, %23, %cst_38 {dimension_numbers = #tpu.dot_dimension_numbers<[1], [0], [0], [1], [0, 0, 1, 1], [], []>} : vector<2x32xf32>, vector<32x128xf32>, vector<2x128xf32> -> vector<2x128xf32>
    %224 = arith.addf %222, %223 : vector<2x128xf32>
    %225 = vector.extract_strided_slice %224 {offsets = [0, 0], sizes = [2, 32], strides = [1, 1]} : vector<2x128xf32> to vector<2x32xf32>
    %226 = arith.negf %225 : vector<2x32xf32>
    %227 = math.exp %226 : vector<2x32xf32>
    %cst_39 = arith.constant 1.000000e+00 : f32
    %228 = vector.broadcast %cst_39 : f32 to vector<2x32xf32>
    %229 = arith.addf %228, %227 : vector<2x32xf32>
    %230 = arith.divf %228, %229 : vector<2x32xf32>
    %231 = vector.extract_strided_slice %224 {offsets = [0, 32], sizes = [2, 32], strides = [1, 1]} : vector<2x128xf32> to vector<2x32xf32>
    %232 = arith.negf %231 : vector<2x32xf32>
    %233 = math.exp %232 : vector<2x32xf32>
    %cst_40 = arith.constant 1.000000e+00 : f32
    %234 = vector.broadcast %cst_40 : f32 to vector<2x32xf32>
    %235 = arith.addf %234, %233 : vector<2x32xf32>
    %236 = arith.divf %234, %235 : vector<2x32xf32>
    %237 = vector.extract_strided_slice %224 {offsets = [0, 64], sizes = [2, 32], strides = [1, 1]} : vector<2x128xf32> to vector<2x32xf32>
    %238 = math.tanh %237 : vector<2x32xf32>
    %239 = vector.extract_strided_slice %224 {offsets = [0, 96], sizes = [2, 32], strides = [1, 1]} : vector<2x128xf32> to vector<2x32xf32>
    %240 = arith.negf %239 : vector<2x32xf32>
    %241 = math.exp %240 : vector<2x32xf32>
    %cst_41 = arith.constant 1.000000e+00 : f32
    %242 = vector.broadcast %cst_41 : f32 to vector<2x32xf32>
    %243 = arith.addf %242, %241 : vector<2x32xf32>
    %244 = arith.divf %242, %243 : vector<2x32xf32>
    %245 = arith.mulf %236, %219 : vector<2x32xf32>
    %246 = arith.mulf %230, %238 : vector<2x32xf32>
    %247 = arith.addf %245, %246 : vector<2x32xf32>
    %248 = math.tanh %247 : vector<2x32xf32>
    %249 = arith.mulf %244, %248 : vector<2x32xf32>
    %250 = tpu.concatenate %53, %81, %109, %137, %165, %193, %221, %249 in 0 : vector<2x32xf32>, vector<2x32xf32>, vector<2x32xf32>, vector<2x32xf32>, vector<2x32xf32>, vector<2x32xf32>, vector<2x32xf32>, vector<2x32xf32> -> vector<16x32xf32>
    %c0_42 = arith.constant 0 : index
    %c0_43 = arith.constant 0 : index
    %251 = vector.load %arg4[%c0_42, %c0_43] : memref<32x64xf32, #tpu.memory_space<vmem>>, vector<32x64xf32>
    %cst_44 = arith.constant dense<0.000000e+00> : vector<16x64xf32>
    %252 = tpu.matmul %250, %251, %cst_44 {dimension_numbers = #tpu.dot_dimension_numbers<[1], [0], [0], [1], [0, 0, 1, 1], [], []>} : vector<16x32xf32>, vector<32x64xf32>, vector<16x64xf32> -> vector<16x64xf32>
    %c0_45 = arith.constant 0 : index
    %c0_46 = arith.constant 0 : index
    %253 = vector.load %arg6[%c0_45, %c0_46] : memref<1x64xf32, #tpu.memory_space<vmem>>, vector<1x64xf32>
    %254 = vector.broadcast %253 : vector<1x64xf32> to vector<16x64xf32>
    %255 = arith.addf %252, %254 : vector<16x64xf32>
    %c0_47 = arith.constant 0 : index
    %c0_48 = arith.constant 0 : index
    %256 = vector.load %arg5[%c0_47, %c0_48] : memref<16x64xf32, #tpu.memory_space<vmem>>, vector<16x64xf32>
    %cst_49 = arith.constant 0.000000e+00 : f32
    %257 = vector.broadcast %cst_49 : f32 to vector<2x16xf32>
    %cst_50 = arith.constant 0.000000e+00 : f32
    %258 = vector.broadcast %cst_50 : f32 to vector<2x16xf32>
    %259 = vector.extract_strided_slice %255 {offsets = [0, 0], sizes = [2, 64], strides = [1, 1]} : vector<16x64xf32> to vector<2x64xf32>
    %cst_51 = arith.constant dense<0.000000e+00> : vector<2x64xf32>
    %260 = tpu.matmul %257, %256, %cst_51 {dimension_numbers = #tpu.dot_dimension_numbers<[1], [0], [0], [1], [0, 0, 1, 1], [], []>} : vector<2x16xf32>, vector<16x64xf32>, vector<2x64xf32> -> vector<2x64xf32>
    %261 = arith.addf %259, %260 : vector<2x64xf32>
    %262 = vector.extract_strided_slice %261 {offsets = [0, 0], sizes = [2, 16], strides = [1, 1]} : vector<2x64xf32> to vector<2x16xf32>
    %263 = arith.negf %262 : vector<2x16xf32>
    %264 = math.exp %263 : vector<2x16xf32>
    %cst_52 = arith.constant 1.000000e+00 : f32
    %265 = vector.broadcast %cst_52 : f32 to vector<2x16xf32>
    %266 = arith.addf %265, %264 : vector<2x16xf32>
    %267 = arith.divf %265, %266 : vector<2x16xf32>
    %268 = vector.extract_strided_slice %261 {offsets = [0, 16], sizes = [2, 16], strides = [1, 1]} : vector<2x64xf32> to vector<2x16xf32>
    %269 = arith.negf %268 : vector<2x16xf32>
    %270 = math.exp %269 : vector<2x16xf32>
    %cst_53 = arith.constant 1.000000e+00 : f32
    %271 = vector.broadcast %cst_53 : f32 to vector<2x16xf32>
    %272 = arith.addf %271, %270 : vector<2x16xf32>
    %273 = arith.divf %271, %272 : vector<2x16xf32>
    %274 = vector.extract_strided_slice %261 {offsets = [0, 32], sizes = [2, 16], strides = [1, 1]} : vector<2x64xf32> to vector<2x16xf32>
    %275 = math.tanh %274 : vector<2x16xf32>
    %276 = vector.extract_strided_slice %261 {offsets = [0, 48], sizes = [2, 16], strides = [1, 1]} : vector<2x64xf32> to vector<2x16xf32>
    %277 = arith.negf %276 : vector<2x16xf32>
    %278 = math.exp %277 : vector<2x16xf32>
    %cst_54 = arith.constant 1.000000e+00 : f32
    %279 = vector.broadcast %cst_54 : f32 to vector<2x16xf32>
    %280 = arith.addf %279, %278 : vector<2x16xf32>
    %281 = arith.divf %279, %280 : vector<2x16xf32>
    %282 = arith.mulf %273, %258 : vector<2x16xf32>
    %283 = arith.mulf %267, %275 : vector<2x16xf32>
    %284 = arith.addf %282, %283 : vector<2x16xf32>
    %285 = math.tanh %284 : vector<2x16xf32>
    %286 = arith.mulf %281, %285 : vector<2x16xf32>
    %287 = vector.extract_strided_slice %255 {offsets = [2, 0], sizes = [2, 64], strides = [1, 1]} : vector<16x64xf32> to vector<2x64xf32>
    %cst_55 = arith.constant dense<0.000000e+00> : vector<2x64xf32>
    %288 = tpu.matmul %286, %256, %cst_55 {dimension_numbers = #tpu.dot_dimension_numbers<[1], [0], [0], [1], [0, 0, 1, 1], [], []>} : vector<2x16xf32>, vector<16x64xf32>, vector<2x64xf32> -> vector<2x64xf32>
    %289 = arith.addf %287, %288 : vector<2x64xf32>
    %290 = vector.extract_strided_slice %289 {offsets = [0, 0], sizes = [2, 16], strides = [1, 1]} : vector<2x64xf32> to vector<2x16xf32>
    %291 = arith.negf %290 : vector<2x16xf32>
    %292 = math.exp %291 : vector<2x16xf32>
    %cst_56 = arith.constant 1.000000e+00 : f32
    %293 = vector.broadcast %cst_56 : f32 to vector<2x16xf32>
    %294 = arith.addf %293, %292 : vector<2x16xf32>
    %295 = arith.divf %293, %294 : vector<2x16xf32>
    %296 = vector.extract_strided_slice %289 {offsets = [0, 16], sizes = [2, 16], strides = [1, 1]} : vector<2x64xf32> to vector<2x16xf32>
    %297 = arith.negf %296 : vector<2x16xf32>
    %298 = math.exp %297 : vector<2x16xf32>
    %cst_57 = arith.constant 1.000000e+00 : f32
    %299 = vector.broadcast %cst_57 : f32 to vector<2x16xf32>
    %300 = arith.addf %299, %298 : vector<2x16xf32>
    %301 = arith.divf %299, %300 : vector<2x16xf32>
    %302 = vector.extract_strided_slice %289 {offsets = [0, 32], sizes = [2, 16], strides = [1, 1]} : vector<2x64xf32> to vector<2x16xf32>
    %303 = math.tanh %302 : vector<2x16xf32>
    %304 = vector.extract_strided_slice %289 {offsets = [0, 48], sizes = [2, 16], strides = [1, 1]} : vector<2x64xf32> to vector<2x16xf32>
    %305 = arith.negf %304 : vector<2x16xf32>
    %306 = math.exp %305 : vector<2x16xf32>
    %cst_58 = arith.constant 1.000000e+00 : f32
    %307 = vector.broadcast %cst_58 : f32 to vector<2x16xf32>
    %308 = arith.addf %307, %306 : vector<2x16xf32>
    %309 = arith.divf %307, %308 : vector<2x16xf32>
    %310 = arith.mulf %301, %284 : vector<2x16xf32>
    %311 = arith.mulf %295, %303 : vector<2x16xf32>
    %312 = arith.addf %310, %311 : vector<2x16xf32>
    %313 = math.tanh %312 : vector<2x16xf32>
    %314 = arith.mulf %309, %313 : vector<2x16xf32>
    %315 = vector.extract_strided_slice %255 {offsets = [4, 0], sizes = [2, 64], strides = [1, 1]} : vector<16x64xf32> to vector<2x64xf32>
    %cst_59 = arith.constant dense<0.000000e+00> : vector<2x64xf32>
    %316 = tpu.matmul %314, %256, %cst_59 {dimension_numbers = #tpu.dot_dimension_numbers<[1], [0], [0], [1], [0, 0, 1, 1], [], []>} : vector<2x16xf32>, vector<16x64xf32>, vector<2x64xf32> -> vector<2x64xf32>
    %317 = arith.addf %315, %316 : vector<2x64xf32>
    %318 = vector.extract_strided_slice %317 {offsets = [0, 0], sizes = [2, 16], strides = [1, 1]} : vector<2x64xf32> to vector<2x16xf32>
    %319 = arith.negf %318 : vector<2x16xf32>
    %320 = math.exp %319 : vector<2x16xf32>
    %cst_60 = arith.constant 1.000000e+00 : f32
    %321 = vector.broadcast %cst_60 : f32 to vector<2x16xf32>
    %322 = arith.addf %321, %320 : vector<2x16xf32>
    %323 = arith.divf %321, %322 : vector<2x16xf32>
    %324 = vector.extract_strided_slice %317 {offsets = [0, 16], sizes = [2, 16], strides = [1, 1]} : vector<2x64xf32> to vector<2x16xf32>
    %325 = arith.negf %324 : vector<2x16xf32>
    %326 = math.exp %325 : vector<2x16xf32>
    %cst_61 = arith.constant 1.000000e+00 : f32
    %327 = vector.broadcast %cst_61 : f32 to vector<2x16xf32>
    %328 = arith.addf %327, %326 : vector<2x16xf32>
    %329 = arith.divf %327, %328 : vector<2x16xf32>
    %330 = vector.extract_strided_slice %317 {offsets = [0, 32], sizes = [2, 16], strides = [1, 1]} : vector<2x64xf32> to vector<2x16xf32>
    %331 = math.tanh %330 : vector<2x16xf32>
    %332 = vector.extract_strided_slice %317 {offsets = [0, 48], sizes = [2, 16], strides = [1, 1]} : vector<2x64xf32> to vector<2x16xf32>
    %333 = arith.negf %332 : vector<2x16xf32>
    %334 = math.exp %333 : vector<2x16xf32>
    %cst_62 = arith.constant 1.000000e+00 : f32
    %335 = vector.broadcast %cst_62 : f32 to vector<2x16xf32>
    %336 = arith.addf %335, %334 : vector<2x16xf32>
    %337 = arith.divf %335, %336 : vector<2x16xf32>
    %338 = arith.mulf %329, %312 : vector<2x16xf32>
    %339 = arith.mulf %323, %331 : vector<2x16xf32>
    %340 = arith.addf %338, %339 : vector<2x16xf32>
    %341 = math.tanh %340 : vector<2x16xf32>
    %342 = arith.mulf %337, %341 : vector<2x16xf32>
    %343 = vector.extract_strided_slice %255 {offsets = [6, 0], sizes = [2, 64], strides = [1, 1]} : vector<16x64xf32> to vector<2x64xf32>
    %cst_63 = arith.constant dense<0.000000e+00> : vector<2x64xf32>
    %344 = tpu.matmul %342, %256, %cst_63 {dimension_numbers = #tpu.dot_dimension_numbers<[1], [0], [0], [1], [0, 0, 1, 1], [], []>} : vector<2x16xf32>, vector<16x64xf32>, vector<2x64xf32> -> vector<2x64xf32>
    %345 = arith.addf %343, %344 : vector<2x64xf32>
    %346 = vector.extract_strided_slice %345 {offsets = [0, 0], sizes = [2, 16], strides = [1, 1]} : vector<2x64xf32> to vector<2x16xf32>
    %347 = arith.negf %346 : vector<2x16xf32>
    %348 = math.exp %347 : vector<2x16xf32>
    %cst_64 = arith.constant 1.000000e+00 : f32
    %349 = vector.broadcast %cst_64 : f32 to vector<2x16xf32>
    %350 = arith.addf %349, %348 : vector<2x16xf32>
    %351 = arith.divf %349, %350 : vector<2x16xf32>
    %352 = vector.extract_strided_slice %345 {offsets = [0, 16], sizes = [2, 16], strides = [1, 1]} : vector<2x64xf32> to vector<2x16xf32>
    %353 = arith.negf %352 : vector<2x16xf32>
    %354 = math.exp %353 : vector<2x16xf32>
    %cst_65 = arith.constant 1.000000e+00 : f32
    %355 = vector.broadcast %cst_65 : f32 to vector<2x16xf32>
    %356 = arith.addf %355, %354 : vector<2x16xf32>
    %357 = arith.divf %355, %356 : vector<2x16xf32>
    %358 = vector.extract_strided_slice %345 {offsets = [0, 32], sizes = [2, 16], strides = [1, 1]} : vector<2x64xf32> to vector<2x16xf32>
    %359 = math.tanh %358 : vector<2x16xf32>
    %360 = vector.extract_strided_slice %345 {offsets = [0, 48], sizes = [2, 16], strides = [1, 1]} : vector<2x64xf32> to vector<2x16xf32>
    %361 = arith.negf %360 : vector<2x16xf32>
    %362 = math.exp %361 : vector<2x16xf32>
    %cst_66 = arith.constant 1.000000e+00 : f32
    %363 = vector.broadcast %cst_66 : f32 to vector<2x16xf32>
    %364 = arith.addf %363, %362 : vector<2x16xf32>
    %365 = arith.divf %363, %364 : vector<2x16xf32>
    %366 = arith.mulf %357, %340 : vector<2x16xf32>
    %367 = arith.mulf %351, %359 : vector<2x16xf32>
    %368 = arith.addf %366, %367 : vector<2x16xf32>
    %369 = math.tanh %368 : vector<2x16xf32>
    %370 = arith.mulf %365, %369 : vector<2x16xf32>
    %371 = vector.extract_strided_slice %255 {offsets = [8, 0], sizes = [2, 64], strides = [1, 1]} : vector<16x64xf32> to vector<2x64xf32>
    %cst_67 = arith.constant dense<0.000000e+00> : vector<2x64xf32>
    %372 = tpu.matmul %370, %256, %cst_67 {dimension_numbers = #tpu.dot_dimension_numbers<[1], [0], [0], [1], [0, 0, 1, 1], [], []>} : vector<2x16xf32>, vector<16x64xf32>, vector<2x64xf32> -> vector<2x64xf32>
    %373 = arith.addf %371, %372 : vector<2x64xf32>
    %374 = vector.extract_strided_slice %373 {offsets = [0, 0], sizes = [2, 16], strides = [1, 1]} : vector<2x64xf32> to vector<2x16xf32>
    %375 = arith.negf %374 : vector<2x16xf32>
    %376 = math.exp %375 : vector<2x16xf32>
    %cst_68 = arith.constant 1.000000e+00 : f32
    %377 = vector.broadcast %cst_68 : f32 to vector<2x16xf32>
    %378 = arith.addf %377, %376 : vector<2x16xf32>
    %379 = arith.divf %377, %378 : vector<2x16xf32>
    %380 = vector.extract_strided_slice %373 {offsets = [0, 16], sizes = [2, 16], strides = [1, 1]} : vector<2x64xf32> to vector<2x16xf32>
    %381 = arith.negf %380 : vector<2x16xf32>
    %382 = math.exp %381 : vector<2x16xf32>
    %cst_69 = arith.constant 1.000000e+00 : f32
    %383 = vector.broadcast %cst_69 : f32 to vector<2x16xf32>
    %384 = arith.addf %383, %382 : vector<2x16xf32>
    %385 = arith.divf %383, %384 : vector<2x16xf32>
    %386 = vector.extract_strided_slice %373 {offsets = [0, 32], sizes = [2, 16], strides = [1, 1]} : vector<2x64xf32> to vector<2x16xf32>
    %387 = math.tanh %386 : vector<2x16xf32>
    %388 = vector.extract_strided_slice %373 {offsets = [0, 48], sizes = [2, 16], strides = [1, 1]} : vector<2x64xf32> to vector<2x16xf32>
    %389 = arith.negf %388 : vector<2x16xf32>
    %390 = math.exp %389 : vector<2x16xf32>
    %cst_70 = arith.constant 1.000000e+00 : f32
    %391 = vector.broadcast %cst_70 : f32 to vector<2x16xf32>
    %392 = arith.addf %391, %390 : vector<2x16xf32>
    %393 = arith.divf %391, %392 : vector<2x16xf32>
    %394 = arith.mulf %385, %368 : vector<2x16xf32>
    %395 = arith.mulf %379, %387 : vector<2x16xf32>
    %396 = arith.addf %394, %395 : vector<2x16xf32>
    %397 = math.tanh %396 : vector<2x16xf32>
    %398 = arith.mulf %393, %397 : vector<2x16xf32>
    %399 = vector.extract_strided_slice %255 {offsets = [10, 0], sizes = [2, 64], strides = [1, 1]} : vector<16x64xf32> to vector<2x64xf32>
    %cst_71 = arith.constant dense<0.000000e+00> : vector<2x64xf32>
    %400 = tpu.matmul %398, %256, %cst_71 {dimension_numbers = #tpu.dot_dimension_numbers<[1], [0], [0], [1], [0, 0, 1, 1], [], []>} : vector<2x16xf32>, vector<16x64xf32>, vector<2x64xf32> -> vector<2x64xf32>
    %401 = arith.addf %399, %400 : vector<2x64xf32>
    %402 = vector.extract_strided_slice %401 {offsets = [0, 0], sizes = [2, 16], strides = [1, 1]} : vector<2x64xf32> to vector<2x16xf32>
    %403 = arith.negf %402 : vector<2x16xf32>
    %404 = math.exp %403 : vector<2x16xf32>
    %cst_72 = arith.constant 1.000000e+00 : f32
    %405 = vector.broadcast %cst_72 : f32 to vector<2x16xf32>
    %406 = arith.addf %405, %404 : vector<2x16xf32>
    %407 = arith.divf %405, %406 : vector<2x16xf32>
    %408 = vector.extract_strided_slice %401 {offsets = [0, 16], sizes = [2, 16], strides = [1, 1]} : vector<2x64xf32> to vector<2x16xf32>
    %409 = arith.negf %408 : vector<2x16xf32>
    %410 = math.exp %409 : vector<2x16xf32>
    %cst_73 = arith.constant 1.000000e+00 : f32
    %411 = vector.broadcast %cst_73 : f32 to vector<2x16xf32>
    %412 = arith.addf %411, %410 : vector<2x16xf32>
    %413 = arith.divf %411, %412 : vector<2x16xf32>
    %414 = vector.extract_strided_slice %401 {offsets = [0, 32], sizes = [2, 16], strides = [1, 1]} : vector<2x64xf32> to vector<2x16xf32>
    %415 = math.tanh %414 : vector<2x16xf32>
    %416 = vector.extract_strided_slice %401 {offsets = [0, 48], sizes = [2, 16], strides = [1, 1]} : vector<2x64xf32> to vector<2x16xf32>
    %417 = arith.negf %416 : vector<2x16xf32>
    %418 = math.exp %417 : vector<2x16xf32>
    %cst_74 = arith.constant 1.000000e+00 : f32
    %419 = vector.broadcast %cst_74 : f32 to vector<2x16xf32>
    %420 = arith.addf %419, %418 : vector<2x16xf32>
    %421 = arith.divf %419, %420 : vector<2x16xf32>
    %422 = arith.mulf %413, %396 : vector<2x16xf32>
    %423 = arith.mulf %407, %415 : vector<2x16xf32>
    %424 = arith.addf %422, %423 : vector<2x16xf32>
    %425 = math.tanh %424 : vector<2x16xf32>
    %426 = arith.mulf %421, %425 : vector<2x16xf32>
    %427 = vector.extract_strided_slice %255 {offsets = [12, 0], sizes = [2, 64], strides = [1, 1]} : vector<16x64xf32> to vector<2x64xf32>
    %cst_75 = arith.constant dense<0.000000e+00> : vector<2x64xf32>
    %428 = tpu.matmul %426, %256, %cst_75 {dimension_numbers = #tpu.dot_dimension_numbers<[1], [0], [0], [1], [0, 0, 1, 1], [], []>} : vector<2x16xf32>, vector<16x64xf32>, vector<2x64xf32> -> vector<2x64xf32>
    %429 = arith.addf %427, %428 : vector<2x64xf32>
    %430 = vector.extract_strided_slice %429 {offsets = [0, 0], sizes = [2, 16], strides = [1, 1]} : vector<2x64xf32> to vector<2x16xf32>
    %431 = arith.negf %430 : vector<2x16xf32>
    %432 = math.exp %431 : vector<2x16xf32>
    %cst_76 = arith.constant 1.000000e+00 : f32
    %433 = vector.broadcast %cst_76 : f32 to vector<2x16xf32>
    %434 = arith.addf %433, %432 : vector<2x16xf32>
    %435 = arith.divf %433, %434 : vector<2x16xf32>
    %436 = vector.extract_strided_slice %429 {offsets = [0, 16], sizes = [2, 16], strides = [1, 1]} : vector<2x64xf32> to vector<2x16xf32>
    %437 = arith.negf %436 : vector<2x16xf32>
    %438 = math.exp %437 : vector<2x16xf32>
    %cst_77 = arith.constant 1.000000e+00 : f32
    %439 = vector.broadcast %cst_77 : f32 to vector<2x16xf32>
    %440 = arith.addf %439, %438 : vector<2x16xf32>
    %441 = arith.divf %439, %440 : vector<2x16xf32>
    %442 = vector.extract_strided_slice %429 {offsets = [0, 32], sizes = [2, 16], strides = [1, 1]} : vector<2x64xf32> to vector<2x16xf32>
    %443 = math.tanh %442 : vector<2x16xf32>
    %444 = vector.extract_strided_slice %429 {offsets = [0, 48], sizes = [2, 16], strides = [1, 1]} : vector<2x64xf32> to vector<2x16xf32>
    %445 = arith.negf %444 : vector<2x16xf32>
    %446 = math.exp %445 : vector<2x16xf32>
    %cst_78 = arith.constant 1.000000e+00 : f32
    %447 = vector.broadcast %cst_78 : f32 to vector<2x16xf32>
    %448 = arith.addf %447, %446 : vector<2x16xf32>
    %449 = arith.divf %447, %448 : vector<2x16xf32>
    %450 = arith.mulf %441, %424 : vector<2x16xf32>
    %451 = arith.mulf %435, %443 : vector<2x16xf32>
    %452 = arith.addf %450, %451 : vector<2x16xf32>
    %453 = math.tanh %452 : vector<2x16xf32>
    %454 = arith.mulf %449, %453 : vector<2x16xf32>
    %455 = vector.extract_strided_slice %255 {offsets = [14, 0], sizes = [2, 64], strides = [1, 1]} : vector<16x64xf32> to vector<2x64xf32>
    %cst_79 = arith.constant dense<0.000000e+00> : vector<2x64xf32>
    %456 = tpu.matmul %454, %256, %cst_79 {dimension_numbers = #tpu.dot_dimension_numbers<[1], [0], [0], [1], [0, 0, 1, 1], [], []>} : vector<2x16xf32>, vector<16x64xf32>, vector<2x64xf32> -> vector<2x64xf32>
    %457 = arith.addf %455, %456 : vector<2x64xf32>
    %458 = vector.extract_strided_slice %457 {offsets = [0, 0], sizes = [2, 16], strides = [1, 1]} : vector<2x64xf32> to vector<2x16xf32>
    %459 = arith.negf %458 : vector<2x16xf32>
    %460 = math.exp %459 : vector<2x16xf32>
    %cst_80 = arith.constant 1.000000e+00 : f32
    %461 = vector.broadcast %cst_80 : f32 to vector<2x16xf32>
    %462 = arith.addf %461, %460 : vector<2x16xf32>
    %463 = arith.divf %461, %462 : vector<2x16xf32>
    %464 = vector.extract_strided_slice %457 {offsets = [0, 16], sizes = [2, 16], strides = [1, 1]} : vector<2x64xf32> to vector<2x16xf32>
    %465 = arith.negf %464 : vector<2x16xf32>
    %466 = math.exp %465 : vector<2x16xf32>
    %cst_81 = arith.constant 1.000000e+00 : f32
    %467 = vector.broadcast %cst_81 : f32 to vector<2x16xf32>
    %468 = arith.addf %467, %466 : vector<2x16xf32>
    %469 = arith.divf %467, %468 : vector<2x16xf32>
    %470 = vector.extract_strided_slice %457 {offsets = [0, 32], sizes = [2, 16], strides = [1, 1]} : vector<2x64xf32> to vector<2x16xf32>
    %471 = math.tanh %470 : vector<2x16xf32>
    %472 = vector.extract_strided_slice %457 {offsets = [0, 48], sizes = [2, 16], strides = [1, 1]} : vector<2x64xf32> to vector<2x16xf32>
    %473 = arith.negf %472 : vector<2x16xf32>
    %474 = math.exp %473 : vector<2x16xf32>
    %cst_82 = arith.constant 1.000000e+00 : f32
    %475 = vector.broadcast %cst_82 : f32 to vector<2x16xf32>
    %476 = arith.addf %475, %474 : vector<2x16xf32>
    %477 = arith.divf %475, %476 : vector<2x16xf32>
    %478 = arith.mulf %469, %452 : vector<2x16xf32>
    %479 = arith.mulf %463, %471 : vector<2x16xf32>
    %480 = arith.addf %478, %479 : vector<2x16xf32>
    %481 = math.tanh %480 : vector<2x16xf32>
    %482 = arith.mulf %477, %481 : vector<2x16xf32>
    %483 = tpu.concatenate %286, %314, %342, %370, %398, %426, %454, %482 in 0 : vector<2x16xf32>, vector<2x16xf32>, vector<2x16xf32>, vector<2x16xf32>, vector<2x16xf32>, vector<2x16xf32>, vector<2x16xf32>, vector<2x16xf32> -> vector<16x16xf32>
    %c0_83 = arith.constant 0 : index
    %c0_84 = arith.constant 0 : index
    %484 = vector.load %arg7[%c0_83, %c0_84] : memref<16x8xf32, #tpu.memory_space<vmem>>, vector<16x8xf32>
    %cst_85 = arith.constant dense<0.000000e+00> : vector<16x8xf32>
    %485 = tpu.matmul %483, %484, %cst_85 {dimension_numbers = #tpu.dot_dimension_numbers<[1], [0], [0], [1], [0, 0, 1, 1], [], []>} : vector<16x16xf32>, vector<16x8xf32>, vector<16x8xf32> -> vector<16x8xf32>
    %c0_86 = arith.constant 0 : index
    %c0_87 = arith.constant 0 : index
    %486 = vector.load %arg8[%c0_86, %c0_87] : memref<1x8xf32, #tpu.memory_space<vmem>>, vector<1x8xf32>
    %487 = vector.broadcast %486 : vector<1x8xf32> to vector<16x8xf32>
    %488 = arith.addf %485, %487 : vector<16x8xf32>
    %cst_88 = arith.constant 0.000000e+00 : f32
    %489 = vector.broadcast %cst_88 : f32 to vector<16x8xf32>
    %490 = arith.maximumf %488, %489 : vector<16x8xf32>
    %c0_89 = arith.constant 0 : index
    %c0_90 = arith.constant 0 : index
    %491 = vector.load %arg9[%c0_89, %c0_90] : memref<8x3xf32, #tpu.memory_space<vmem>>, vector<8x3xf32>
    %cst_91 = arith.constant dense<0.000000e+00> : vector<16x3xf32>
    %492 = tpu.matmul %490, %491, %cst_91 {dimension_numbers = #tpu.dot_dimension_numbers<[1], [0], [0], [1], [0, 0, 1, 1], [], []>} : vector<16x8xf32>, vector<8x3xf32>, vector<16x3xf32> -> vector<16x3xf32>
    %c0_92 = arith.constant 0 : index
    %c0_93 = arith.constant 0 : index
    %493 = vector.load %arg10[%c0_92, %c0_93] : memref<1x3xf32, #tpu.memory_space<vmem>>, vector<1x3xf32>
    %494 = vector.broadcast %493 : vector<1x3xf32> to vector<16x3xf32>
    %495 = arith.addf %492, %494 : vector<16x3xf32>
    %cst_94 = arith.constant 0.000000e+00 : f32
    %496 = vector.broadcast %cst_94 : f32 to vector<16x3xf32>
    %497 = arith.maximumf %495, %496 : vector<16x3xf32>
    %c0_95 = arith.constant 0 : index
    %c0_96 = arith.constant 0 : index
    %498 = vector.load %arg11[%c0_95, %c0_96] : memref<3x1xf32, #tpu.memory_space<vmem>>, vector<3x1xf32>
    %cst_97 = arith.constant dense<0.000000e+00> : vector<16x1xf32>
    %499 = tpu.matmul %497, %498, %cst_97 {dimension_numbers = #tpu.dot_dimension_numbers<[1], [0], [0], [1], [0, 0, 1, 1], [], []>} : vector<16x3xf32>, vector<3x1xf32>, vector<16x1xf32> -> vector<16x1xf32>
    %c0_98 = arith.constant 0 : index
    %c0_99 = arith.constant 0 : index
    %500 = vector.load %arg12[%c0_98, %c0_99] : memref<1x1xf32, #tpu.memory_space<vmem>>, vector<1x1xf32>
    %501 = vector.broadcast %500 : vector<1x1xf32> to vector<16x1xf32>
    %502 = arith.addf %499, %501 : vector<16x1xf32>
    %503 = vector.extract_strided_slice %502 {offsets = [0, 0], sizes = [1, 1], strides = [1, 1]} : vector<16x1xf32> to vector<1x1xf32>
    %504 = vector.extract_strided_slice %502 {offsets = [2, 0], sizes = [1, 1], strides = [1, 1]} : vector<16x1xf32> to vector<1x1xf32>
    %505 = vector.extract_strided_slice %502 {offsets = [4, 0], sizes = [1, 1], strides = [1, 1]} : vector<16x1xf32> to vector<1x1xf32>
    %506 = vector.extract_strided_slice %502 {offsets = [6, 0], sizes = [1, 1], strides = [1, 1]} : vector<16x1xf32> to vector<1x1xf32>
    %507 = vector.extract_strided_slice %502 {offsets = [8, 0], sizes = [1, 1], strides = [1, 1]} : vector<16x1xf32> to vector<1x1xf32>
    %508 = vector.extract_strided_slice %502 {offsets = [10, 0], sizes = [1, 1], strides = [1, 1]} : vector<16x1xf32> to vector<1x1xf32>
    %509 = vector.extract_strided_slice %502 {offsets = [12, 0], sizes = [1, 1], strides = [1, 1]} : vector<16x1xf32> to vector<1x1xf32>
    %510 = vector.extract_strided_slice %502 {offsets = [14, 0], sizes = [1, 1], strides = [1, 1]} : vector<16x1xf32> to vector<1x1xf32>
    %511 = tpu.concatenate %503, %504, %505, %506, %507, %508, %509, %510 in 0 : vector<1x1xf32>, vector<1x1xf32>, vector<1x1xf32>, vector<1x1xf32>, vector<1x1xf32>, vector<1x1xf32>, vector<1x1xf32>, vector<1x1xf32> -> vector<8x1xf32>
    %c0_100 = arith.constant 0 : index
    %c0_101 = arith.constant 0 : index
    %c0_102 = arith.constant 0 : index
    %512 = vector.load %arg13[%c0_100, %c0_101, %c0_102] : memref<2x8x1xf32, #tpu.memory_space<vmem>>, vector<1x8x1xf32>
    %513 = vector.shape_cast %512 : vector<1x8x1xf32> to vector<8x1xf32>
    %514 = vector.shape_cast %511 : vector<8x1xf32> to vector<1x8x1xf32>
    tpu.vector_store %arg13[%c0_100, %c0_101, %c0_102], %514 {strides = array<i32>} : memref<2x8x1xf32, #tpu.memory_space<vmem>>, vector<1x8x1xf32>,
    %515 = vector.extract_strided_slice %502 {offsets = [1, 0], sizes = [1, 1], strides = [1, 1]} : vector<16x1xf32> to vector<1x1xf32>
    %516 = vector.extract_strided_slice %502 {offsets = [3, 0], sizes = [1, 1], strides = [1, 1]} : vector<16x1xf32> to vector<1x1xf32>
    %517 = vector.extract_strided_slice %502 {offsets = [5, 0], sizes = [1, 1], strides = [1, 1]} : vector<16x1xf32> to vector<1x1xf32>
    %518 = vector.extract_strided_slice %502 {offsets = [7, 0], sizes = [1, 1], strides = [1, 1]} : vector<16x1xf32> to vector<1x1xf32>
    %519 = vector.extract_strided_slice %502 {offsets = [9, 0], sizes = [1, 1], strides = [1, 1]} : vector<16x1xf32> to vector<1x1xf32>
    %520 = vector.extract_strided_slice %502 {offsets = [11, 0], sizes = [1, 1], strides = [1, 1]} : vector<16x1xf32> to vector<1x1xf32>
    %521 = vector.extract_strided_slice %502 {offsets = [13, 0], sizes = [1, 1], strides = [1, 1]} : vector<16x1xf32> to vector<1x1xf32>
    %522 = vector.extract_strided_slice %502 {offsets = [15, 0], sizes = [1, 1], strides = [1, 1]} : vector<16x1xf32> to vector<1x1xf32>
    %523 = tpu.concatenate %515, %516, %517, %518, %519, %520, %521, %522 in 0 : vector<1x1xf32>, vector<1x1xf32>, vector<1x1xf32>, vector<1x1xf32>, vector<1x1xf32>, vector<1x1xf32>, vector<1x1xf32>, vector<1x1xf32> -> vector<8x1xf32>
    %c1 = arith.constant 1 : index
    %c0_103 = arith.constant 0 : index
    %c0_104 = arith.constant 0 : index
    %524 = vector.load %arg13[%c1, %c0_103, %c0_104] : memref<2x8x1xf32, #tpu.memory_space<vmem>>, vector<1x8x1xf32>
    %525 = vector.shape_cast %524 : vector<1x8x1xf32> to vector<8x1xf32>
    %526 = vector.shape_cast %523 : vector<8x1xf32> to vector<1x8x1xf32>
    tpu.vector_store %arg13[%c1, %c0_103, %c0_104], %526 {strides = array<i32>} : memref<2x8x1xf32, #tpu.memory_space<vmem>>, vector<1x8x1xf32>,
    return
  }
}

</mosaic_0001>

<bundles_post_ra>
// kernel: tpu_custom_call.1
= control target key start
LH: loop header
LB: loop body
LE: loop exit
PB: predicated region body
PF: predicated region fallthrough
CT: control target
= control target key end

     0   :  { %s2106_s0 = inlined_call_operand.vmem [shape: f32[2,8,4], index: 0, kind: input, shape index: {}]   ;;  %s2107_s1 = inlined_call_operand.vmem [shape: f32[4,128], index: 1, kind: input, shape index: {}]   ;;  %s2108_s2 = inlined_call_operand.vmem [shape: f32[32,128], index: 2, kind: input, shape index: {}]   ;;  %s2109_s3 = inlined_call_operand.vmem [shape: f32[1,128], index: 3, kind: input, shape index: {}]   ;;  %s2110_s4 = inlined_call_operand.hbm [shape: f32[32,64], index: 4, kind: input, shape index: {}]   ;;  %s2111_s5 = inlined_call_operand.hbm [shape: f32[16,64], index: 5, kind: input, shape index: {}]   ;;  %s2112_s6 = inlined_call_operand.vmem [shape: f32[1,64], index: 6, kind: input, shape index: {}]   ;;  %s2113_s7 = inlined_call_operand.vmem [shape: f32[16,8], index: 7, kind: input, shape index: {}]   ;;  %s2114_s8 = inlined_call_operand.vmem [shape: f32[1,8], index: 8, kind: input, shape index: {}]   ;;  %s2115_s9 = inlined_call_operand.vmem [shape: f32[8,3], index: 9, kind: input, shape index: {}]   ;;  %s2116_s10 = inlined_call_operand.vmem [shape: f32[1,3], index: 10, kind: input, shape index: {}]   ;;  %s2117_s11 = inlined_call_operand.vmem [shape: f32[3,1], index: 11, kind: input, shape index: {}]   ;;  %s2118_s12 = inlined_call_operand.<no memory space> [shape: f32[1,1], index: 12, kind: input, shape index: {}]   ;;  %s2119_s13 = inlined_call_operand.vmem [shape: f32[2,8,1], index: 13, kind: output, shape index: {}]  }
   0x1   :  { %v18_v0 = vstv %s2118_s12 }
   0x2   :  { %19 = vst [vmem:[#allocation2] sm:$0x1] %v18_v0 }
   0x3   :  { %20 = vsyncpa [#allocation4], 0  ;;  %s34_s29 = sshll.u32 %s2110_s4, 4  ;;  %s35_s29 = int_to_ptr.hbm [resolvable:$true] %s34_s29 }
   0x4   :  { %21 = vsyncpa [#allocation6], 0  ;;  %s1715_s30 = smov [#allocation3]   ;;  %s47_s17 = sshll.u32 %s2111_s5, 4  ;;  %s48_s17 = int_to_ptr.hbm [resolvable:$true] %s47_s17 }
   0x5   :  { %s36_s14 = sshll.u32 %s1715_s30, 4  ;;  %s1716_s18 = smov 128   ;;  %s37_s14 = int_to_ptr.vmem [resolvable:$true] %s36_s14 }
   0x6   :  { %s1717_s19 = smov 8   ;;  %s1718_s12 = smov [#allocation5]  }
   0x7   :  { %42 = dma.hbm_to_vmem [thread:$0]  %s35_s29, 512, %s37_s14, [#allocation4], %s1716_s18, %s1716_s18, %s1717_s19  }
   0x8   :  { %s49_s20 = sshll.u32 %s1718_s12, 4  ;;  %s50_s20 = int_to_ptr.vmem [resolvable:$true] %s49_s20 }
   0x9   :  { %55 = dma.hbm_to_vmem [thread:$0]  %s48_s17, 256, %s50_s20, [#allocation6], %s1716_s18, %s1716_s18, %s1717_s19  }
   0xa   :  { %1711 = dma.done.wait [#allocation4], 512  }
   0xb   :  { %1712 = vsyncadd [#allocation4], 4294966784 }
   0xc   :  { %1713 = dma.done.wait [#allocation6], 256  }
   0xd   :  { %1714 = vsyncadd [#allocation6], 4294967040  ;;  %vm118_vm0 = vcmask 1043456   ;;  %v166_v1 = vld [vmem:[%s2108_s2 + $0x18] sm:$0xff]  ;;  %v165_v2 = vld [vmem:[%s2108_s2 + $0x10] sm:$0xff]  ;;  %vm83_vm1 = vcmask 1041409  }
   0xe   :  { %vm88_vm2 = vcmask 1043459   ;;  %vm93_vm3 = vcmask 1045509   ;;  %vm98_vm4 = vcmask 1047559   ;;  %183 = vmatpush.msra.mxu3 %v166_v1  ;;  %v164_v3 = vld [vmem:[%s2108_s2 + $0x8] sm:$0xff]  ;;  %v125_v4 = vld [vmem:[%s2107_s1] sm:$0xf]  ;;  %246 = vmatpush.msra.mxu2 %v166_v1 }
   0xf   :  { %v1819_v5 = vld [vmem:[%s2106_s0] sm:$0xff]  ;;  %vm116_vm5 = vcmask 1041408   ;;  %vm120_vm6 = vcmask 1045504   ;;  %1477 = vmatpush.msk.msra.mxu0 %vm118_vm0, %v125_v4  ;;  %v1825_v6 = vld [vmem:[%s2106_s0 + $0x8] sm:$0xff]  ;;  %386 = vmatpush.msra.mxu1 %v166_v1  ;;  %vm130_vm7 = vcmask 31744   ;;  %v1719_v21 = vmov 0.0  }
  0x10   :  { %v86_v7 = vrot.slane %v1819_v5, 7  ;;  %v91_v8 = vrot.slane %v1819_v5, 6  ;;  %v96_v9 = vrot.slane %v1819_v5, 5  ;;  %184 = vmatpush.msra.mxu3 %v165_v2  ;;  %v163_v10 = vld [vmem:[%s2108_s2] sm:$0xff]  ;;  %v82_v11 = vrot.slane %v1825_v6, 7  ;;  %247 = vmatpush.msra.mxu2 %v165_v2  ;;  %s1720_s15 = smov 64  }
  0x11   :  { %v87_v12 = vrot.slane %v1825_v6, 6  ;;  %v92_v13 = vrot.slane %v1825_v6, 5  ;;  %v97_v14 = vrot.slane %v1825_v6, 4  ;;  %387 = vmatpush.msra.mxu1 %v165_v2  ;;  %592 = vmatpush.msrb.mxu0 %v166_v1  ;;  %v1850_v23 = vld [vmem:[%s2109_s3] ss:$0 sm:$0xff]  ;;  %s1721_s3 = smov 32  }
  0x12   :  { %185 = vmatpush.msra.mxu3 %v164_v3  ;;  %v84_v15 = vsel %vm83_vm1, %v82_v11, %v1819_v5  ;;  %248 = vmatpush.msra.mxu2 %v164_v3  ;;  %vm167_vm12 = vcmask 261120   ;;  %s1722_s18 = smov 96   ;;  %s1724_s19 = smov 80  }
  0x13   :  { %v89_v16 = vsel %vm88_vm2, %v87_v12, %v86_v7  ;;  %v94_v17 = vsel %vm93_vm3, %v92_v13, %v91_v8  ;;  %v99_v18 = vsel %vm98_vm4, %v97_v14, %v96_v9  ;;  %388 = vmatpush.msra.mxu1 %v164_v3  ;;  %593 = vmatpush.msrb.mxu0 %v165_v2 }
  0x14   :  { %v117_v19 = vsel %vm116_vm5, %v84_v15, %v89_v16  ;;  %186 = vmatpush.msra.mxu3 %v163_v10  ;;  %249 = vmatpush.msra.mxu2 %v163_v10 }
  0x15   :  { %v119_v20 = vsel %vm118_vm0, %v117_v19, %v94_v17  ;;  %187 = vmatmul.f32.vlgmr.msra.gmra.mxu3 %v1719_v21  ;;  %389 = vmatpush.msra.mxu1 %v163_v10 }
  0x16   :  { %v121_v22 = vsel %vm120_vm6, %v119_v20, %v99_v18  ;;  %316 = vmatpush.msrb.mxu3 %v166_v1  ;;  %456 = vmatpush.msrb.mxu2 %v166_v1 }
  0x17   :  { %1478 = vmatmul.msk.f32.vlgmr.msra.gmra.mxu0 %vm130_vm7, %v121_v22  ;;  %662 = vmatpush.msrb.mxu1 %v166_v1 }
  0x18   :  { %317 = vmatpush.msrb.mxu3 %v165_v2  ;;  %594 = vmatpush.msrb.mxu0 %v164_v3 }
  0x19   :  { %457 = vmatpush.msrb.mxu2 %v165_v2  ;;  %663 = vmatpush.msrb.mxu1 %v165_v2 }
  0x1a   :  { %318 = vmatpush.msrb.mxu3 %v164_v3  ;;  %595 = vmatpush.msrb.mxu0 %v163_v10 }
  0x1b   :  { %458 = vmatpush.msrb.mxu2 %v164_v3  ;;  %664 = vmatpush.msrb.mxu1 %v164_v3 }
  0x1c   :  { %319 = vmatpush.msrb.mxu3 %v163_v10 }
  0x1d   :  { %459 = vmatpush.msrb.mxu2 %v163_v10  ;;  %665 = vmatpush.msrb.mxu1 %v163_v10 }
  0x1e   :  { %522 = vmatpush.msra.mxu3 %v166_v1 }
  0x20   :  { %523 = vmatpush.msra.mxu3 %v165_v2 }
  0x22   :  { %524 = vmatpush.msra.mxu3 %v164_v3 }
  0x24   :  { %525 = vmatpush.msra.mxu3 %v163_v10 }
  0x94   :  { %v157_v24 = vpop.f32.mrf.mxu0 }
  0x95   :  { %v1853_v25 = vadd.f32 %v1850_v23, %v157_v24 }
  0x98   :  { %v188_v26 = vpop.f32.mrf.mxu3 }
  0x99   :  { %v191_v27 = vadd.f32 %v188_v26, %v1853_v25 }
  0x9b   :  { %1535 = vtanh.f32 %v191_v27  ;;  %v1480_v29 = vmul.f32 -1.442695, %v191_v27 }
  0x9d   :  { %1537 = vpow2.f32 %v1480_v29 }
  0xa1   :  { %v1536_v28 = vpop.eup %1535 }
  0xa2   :  { %214 = vrot.lane.b32.xlu0 %v1536_v28, %s1720_s15 }
  0xa3   :  { %v1538_v30 = vpop.eup %1537 }
  0xa4   :  { %v195_v31 = vadd.f32 1.0, %v1538_v30 }
  0xa6   :  { %1539 = vrcp.f32 %v195_v31  ;;  %v207_v37 = vand.u32 2147483648, %v195_v31  ;;  %vm201_vm9 = vweird.f32 %v195_v31  ;;  %v205_v38 = vand.u32 2147483647, %v195_v31 }
  0xa8   :  { %v208_v40 = vor.u32 1.1754944e-38, %v207_v37  ;;  %vm206_vm11 = vcmp.eq.f32.partialorder %v205_v38, 8.507059e+37 }
  0xac   :  { %v1540_v32 = vpop.eup %1539 }
  0xad   :  { %v197_v33 = vmul.f32 %v1540_v32, %v195_v31  ;;  %vm202_vm8 = vweird.f32 %v1540_v32 }
  0xae   :  { %vm203_vm10 = vmor %vm201_vm9, %vm202_vm8 }
  0xaf   :  { %v198_v34 = vsub.f32 1.0, %v197_v33 }
  0xb1   :  { %v199_v35 = vmul.f32 %v1540_v32, %v198_v34 }
  0xb3   :  { %v200_v36 = vadd.f32 %v1540_v32, %v199_v35 }
  0xb5   :  { %v204_v39 = vsel %vm203_vm10, %v1540_v32, %v200_v36 }
  0xb6   :  { %v209_v42 = vsel %vm206_vm11, %v208_v40, %v204_v39 }
  0xb7   :  { %v212_v44 = vmul.f32 0.0, %v209_v42 }
 0x114   :  { %v215_v41 = vpop.permute.xlu0 %214 }
 0x115   :  { %v217_v43 = vmul.f32 %v215_v41, %v209_v42 }
 0x117   :  { %219 = vrot.lane.b32.xlu0 %v217_v43, %s1721_s3 }
 0x189   :  { %v220_v45 = vpop.permute.xlu0 %219 }
 0x18a   :  { %v222_v46 = vadd.f32 %v220_v45, %v212_v44 }
 0x18c   :  { %1541 = vtanh.f32 %v222_v46  ;;  %v279_v8 = vrot.slane %v222_v46, 6 }
 0x192   :  { %v1542_v47 = vpop.eup %1541 }
 0x193   :  { %225 = vrot.lane.b32.xlu1 %v1542_v47, %s1720_s15 }
 0x205   :  { %v226_v48 = vpop.permute.xlu1 %225 }
 0x206   :  { %v1859_v49 = vmul.f32 %v226_v48, %v209_v42 }
 0x208   :  { %230 = vrot.lane.b32.xlu1 %v1859_v49, %s1721_s3 }
 0x27a   :  { %v231_v50 = vpop.permute.xlu1 %230 }
 0x27b   :  { %1481 = vmatmul.msk.f32.vlgmr.msra.gmra.mxu2 %vm167_vm12, %v231_v50 }
 0x2fe   :  { %v251_v51 = vpop.f32.mrf.mxu2 }
 0x2ff   :  { %v255_v52 = vrot.slane %v251_v51, 6 }
 0x301   :  { %v257_v53 = vadd.f32 %v255_v52, %v1853_v25 }
 0x303   :  { %1543 = vtanh.f32 %v257_v53  ;;  %v1482_v55 = vmul.f32 -1.442695, %v257_v53 }
 0x305   :  { %1545 = vpow2.f32 %v1482_v55 }
 0x309   :  { %v1544_v54 = vpop.eup %1543 }
 0x30a   :  { %283 = vrot.lane.b32.xlu2 %v1544_v54, %s1720_s15 }
 0x30b   :  { %v1546_v56 = vpop.eup %1545 }
 0x30c   :  { %v261_v57 = vadd.f32 1.0, %v1546_v56 }
 0x30e   :  { %1547 = vrcp.f32 %v261_v57  ;;  %v273_v63 = vand.u32 2147483648, %v261_v57  ;;  %vm267_vm14 = vweird.f32 %v261_v57  ;;  %v271_v0 = vand.u32 2147483647, %v261_v57 }
 0x310   :  { %v274_v2 = vor.u32 1.1754944e-38, %v273_v63  ;;  %vm272_vm8 = vcmp.eq.f32.partialorder %v271_v0, 8.507059e+37 }
 0x314   :  { %v1548_v58 = vpop.eup %1547 }
 0x315   :  { %v263_v59 = vmul.f32 %v1548_v58, %v261_v57  ;;  %vm268_vm13 = vweird.f32 %v1548_v58 }
 0x316   :  { %vm269_vm15 = vmor %vm267_vm14, %vm268_vm13 }
 0x317   :  { %v264_v60 = vsub.f32 1.0, %v263_v59 }
 0x319   :  { %v265_v61 = vmul.f32 %v1548_v58, %v264_v60 }
 0x31b   :  { %v266_v62 = vadd.f32 %v1548_v58, %v265_v61 }
 0x31d   :  { %v270_v1 = vsel %vm269_vm15, %v1548_v58, %v266_v62 }
 0x31e   :  { %v275_v4 = vsel %vm272_vm8, %v274_v2, %v270_v1 }
 0x31f   :  { %v281_v9 = vmul.f32 %v279_v8, %v275_v4 }
 0x364   :  { %v284_v3 = vpop.permute.xlu2 %283 }
 0x365   :  { %v286_v7 = vmul.f32 %v284_v3, %v275_v4 }
 0x367   :  { %288 = vrot.lane.b32.xlu2 %v286_v7, %s1721_s3 }
 0x3c1   :  { %v289_v10 = vpop.permute.xlu2 %288 }
 0x3c2   :  { %v291_v11 = vadd.f32 %v289_v10, %v281_v9 }
 0x3c4   :  { %1549 = vtanh.f32 %v291_v11  ;;  %v349_v39 = vrot.slane %v291_v11, 6 }
 0x3ca   :  { %v1550_v12 = vpop.eup %1549 }
 0x3cb   :  { %294 = vrot.lane.b32.xlu0 %v1550_v12, %s1720_s15 }
 0x43d   :  { %v295_v13 = vpop.permute.xlu0 %294 }
 0x43e   :  { %v297_v14 = vmul.f32 %v295_v13, %v275_v4 }
 0x440   :  { %v299_v15 = vrot.slane %v297_v14, 2  ;;  %v714_v46 = vsel %vm116_vm5, %v1859_v49, %v297_v14 }
 0x442   :  { %300 = vrot.lane.b32.xlu1 %v299_v15, %s1721_s3  ;;  %v101_v15 = vrot.slane %v1819_v5, 4 }
 0x4b4   :  { %v301_v16 = vpop.permute.xlu1 %300 }
 0x4b5   :  { %1483 = vmatmul.msk.f32.vlgmr.msrb.gmra.mxu3 %vm167_vm12, %v301_v16  ;;  %v102_v16 = vrot.slane %v1825_v6, 3 }
 0x538   :  { %v321_v17 = vpop.f32.mrf.mxu3 }
 0x539   :  { %v325_v18 = vrot.slane %v321_v17, 4  ;;  %v105_v17 = vrot.slane %v1819_v5, 3 }
 0x53b   :  { %v327_v19 = vadd.f32 %v325_v18, %v1853_v25  ;;  %v106_v18 = vrot.slane %v1825_v6, 2 }
 0x53d   :  { %1551 = vtanh.f32 %v327_v19  ;;  %v1484_v22 = vmul.f32 -1.442695, %v327_v19  ;;  %v109_v19 = vrot.slane %v1819_v5, 2 }
 0x53f   :  { %1553 = vpow2.f32 %v1484_v22  ;;  %v103_v22 = vsel %vm83_vm1, %v102_v16, %v101_v15 }
 0x543   :  { %v1552_v20 = vpop.eup %1551 }
 0x544   :  { %353 = vrot.lane.b32.xlu2 %v1552_v20, %s1720_s15  ;;  %v110_v20 = vrot.slane %v1825_v6, 1 }
 0x545   :  { %v1554_v24 = vpop.eup %1553 }
 0x546   :  { %v331_v26 = vadd.f32 1.0, %v1554_v24  ;;  %v107_v24 = vsel %vm88_vm2, %v106_v18, %v105_v17 }
 0x548   :  { %1555 = vrcp.f32 %v331_v26  ;;  %v343_v32 = vand.u32 2147483648, %v331_v26  ;;  %vm337_vm10 = vweird.f32 %v331_v26  ;;  %v341_v33 = vand.u32 2147483647, %v331_v26 }
 0x54a   :  { %v344_v35 = vor.u32 1.1754944e-38, %v343_v32  ;;  %vm342_vm13 = vcmp.eq.f32.partialorder %v341_v33, 8.507059e+37 }
 0x54e   :  { %v1556_v27 = vpop.eup %1555 }
 0x54f   :  { %v333_v28 = vmul.f32 %v1556_v27, %v331_v26  ;;  %vm338_vm9 = vweird.f32 %v1556_v27  ;;  %v113_v26 = vrot.slane %v1819_v5, 1 }
 0x550   :  { %vm339_vm11 = vmor %vm337_vm10, %vm338_vm9 }
 0x551   :  { %v334_v29 = vsub.f32 1.0, %v333_v28  ;;  %v122_v28 = vsel %vm116_vm5, %v103_v22, %v107_v24 }
 0x553   :  { %v335_v30 = vmul.f32 %v1556_v27, %v334_v29  ;;  %v114_v29 = vsel %vm98_vm4, %v1825_v6, %v113_v26 }
 0x555   :  { %v336_v31 = vadd.f32 %v1556_v27, %v335_v30 }
 0x557   :  { %v340_v34 = vsel %vm339_vm11, %v1556_v27, %v336_v31  ;;  %v111_v27 = vsel %vm93_vm3, %v110_v20, %v109_v19 }
 0x558   :  { %v345_v37 = vsel %vm342_vm13, %v344_v35, %v340_v34  ;;  %v123_v30 = vsel %vm118_vm0, %v122_v28, %v111_v27 }
 0x559   :  { %v351_v40 = vmul.f32 %v349_v39, %v345_v37  ;;  %v124_v31 = vsel %vm120_vm6, %v123_v30, %v114_v29 }
 0x55a   :  { %1479 = vmatmul.msk.f32.gmra.mxu0 %vm130_vm7, %v124_v31 }
 0x59e   :  { %v354_v36 = vpop.permute.xlu2 %353 }
 0x59f   :  { %v356_v38 = vmul.f32 %v354_v36, %v345_v37 }
 0x5a1   :  { %358 = vrot.lane.b32.xlu0 %v356_v38, %s1721_s3 }
 0x5d7   :  { %v160_v33 = vpop.f32.mrf.mxu0 }
 0x5d8   :  { %v1906_v34 = vadd.f32 %v1850_v23, %v160_v33 }
 0x613   :  { %v359_v41 = vpop.permute.xlu0 %358 }
 0x614   :  { %v361_v42 = vadd.f32 %v359_v41, %v351_v40 }
 0x616   :  { %1557 = vtanh.f32 %v361_v42  ;;  %v419_v4 = vrot.slane %v361_v42, 6 }
 0x61c   :  { %v1558_v43 = vpop.eup %1557 }
 0x61d   :  { %364 = vrot.lane.b32.xlu1 %v1558_v43, %s1720_s15 }
 0x68f   :  { %v365_v44 = vpop.permute.xlu1 %364 }
 0x690   :  { %v367_v45 = vmul.f32 %v365_v44, %v345_v37 }
 0x692   :  { %v369_v47 = vrot.slane %v367_v45, 4  ;;  %v715_v48 = vsel %vm118_vm0, %v714_v46, %v367_v45 }
 0x694   :  { %370 = vrot.lane.b32.xlu2 %v369_v47, %s1721_s3 }
 0x6ee   :  { %v371_v50 = vpop.permute.xlu2 %370 }
 0x6ef   :  { %1485 = vmatmul.msk.f32.vlgmr.msra.gmra.mxu1 %vm167_vm12, %v371_v50 }
 0x76c   :  { %v391_v51 = vpop.f32.mrf.mxu1 }
 0x76d   :  { %v395_v52 = vrot.slane %v391_v51, 2  ;;  %v723_v51 = vld [vmem:[#allocation3 + $0x18] sm:$0xff] }
 0x76e   :  { %750 = vmatpush.msra.mxu2 %v723_v51 }
 0x76f   :  { %v397_v53 = vadd.f32 %v395_v52, %v1853_v25  ;;  %v722_v52 = vld [vmem:[#allocation3 + $0x10] sm:$0xff] }
 0x770   :  { %751 = vmatpush.msra.mxu2 %v722_v52 }
 0x771   :  { %1559 = vtanh.f32 %v397_v53  ;;  %v1486_v55 = vmul.f32 -1.442695, %v397_v53  ;;  %v721_v53 = vld [vmem:[#allocation3 + $0x8] sm:$0xff] }
 0x772   :  { %752 = vmatpush.msra.mxu2 %v721_v53 }
 0x773   :  { %1561 = vpow2.f32 %v1486_v55 }
 0x777   :  { %v1560_v54 = vpop.eup %1559 }
 0x778   :  { %423 = vrot.lane.b32.xlu0 %v1560_v54, %s1720_s15  ;;  %v720_v54 = vld [vmem:[#allocation3] sm:$0xff] }
 0x779   :  { %v1562_v56 = vpop.eup %1561  ;;  %753 = vmatpush.msra.mxu2 %v720_v54 }
 0x77a   :  { %v401_v49 = vadd.f32 1.0, %v1562_v56 }
 0x77c   :  { %1563 = vrcp.f32 %v401_v49  ;;  %v413_v62 = vand.u32 2147483648, %v401_v49  ;;  %vm407_vm15 = vweird.f32 %v401_v49  ;;  %v411_v63 = vand.u32 2147483647, %v401_v49 }
 0x77e   :  { %v414_v0 = vor.u32 1.1754944e-38, %v413_v62  ;;  %vm412_vm9 = vcmp.eq.f32.partialorder %v411_v63, 8.507059e+37  ;;  %v1922_v62 = vld [vmem:[#allocation5 + $0x8] sm:$0xff]  ;;  %v1924_v63 = vld [vmem:[#allocation5] sm:$0xff] }
 0x77f   :  { %780 = vmatpush.msrb.mxu3 %v1922_v62  ;;  %843 = vmatpush.msra.mxu0 %v1922_v62 }
 0x780   :  { %913 = vmatpush.msra.mxu1 %v1922_v62 }
 0x781   :  { %781 = vmatpush.msrb.mxu3 %v1924_v63  ;;  %844 = vmatpush.msra.mxu0 %v1924_v63 }
 0x782   :  { %v1564_v57 = vpop.eup %1563  ;;  %914 = vmatpush.msra.mxu1 %v1924_v63 }
 0x783   :  { %v403_v58 = vmul.f32 %v1564_v57, %v401_v49  ;;  %vm408_vm14 = vweird.f32 %v1564_v57 }
 0x784   :  { %vm409_vm8 = vmor %vm407_vm15, %vm408_vm14 }
 0x785   :  { %v404_v59 = vsub.f32 1.0, %v403_v58 }
 0x787   :  { %v405_v60 = vmul.f32 %v1564_v57, %v404_v59 }
 0x789   :  { %v406_v61 = vadd.f32 %v1564_v57, %v405_v60 }
 0x78b   :  { %v410_v25 = vsel %vm409_vm8, %v1564_v57, %v406_v61 }
 0x78c   :  { %v415_v2 = vsel %vm412_vm9, %v414_v0, %v410_v25 }
 0x78d   :  { %v421_v7 = vmul.f32 %v419_v4, %v415_v2 }
 0x7ea   :  { %v424_v1 = vpop.permute.xlu0 %423 }
 0x7eb   :  { %v426_v3 = vmul.f32 %v424_v1, %v415_v2 }
 0x7ed   :  { %428 = vrot.lane.b32.xlu1 %v426_v3, %s1721_s3 }
 0x85f   :  { %v429_v8 = vpop.permute.xlu1 %428 }
 0x860   :  { %v1882_v9 = vadd.f32 %v429_v8, %v421_v7 }
 0x862   :  { %1565 = vtanh.f32 %v1882_v9  ;;  %v486_v55 = vrot.slane %v1882_v9, 6 }
 0x868   :  { %v1566_v10 = vpop.eup %1565 }
 0x869   :  { %434 = vrot.lane.b32.xlu2 %v1566_v10, %s1720_s15 }
 0x8c3   :  { %v435_v11 = vpop.permute.xlu2 %434 }
 0x8c4   :  { %v437_v12 = vmul.f32 %v435_v11, %v415_v2  ;;  %v1943_v2 = vld [vmem:[%s2112_s6] ss:$0 sm:$0xff]  ;;  %s1723_s6 = smov 16  }
 0x8c6   :  { %v439_v13 = vrot.slane %v437_v12, 6  ;;  %v716_v14 = vsel %vm120_vm6, %v715_v48, %v437_v12 }
 0x8c8   :  { %440 = vrot.lane.b32.xlu0 %v439_v13, %s1721_s3 }
 0x93a   :  { %v441_v32 = vpop.permute.xlu0 %440 }
 0x93b   :  { %1487 = vmatmul.msk.f32.vlgmr.msrb.gmra.mxu2 %vm167_vm12, %v441_v32 }
 0x93c   :  { %1189 = vmatpush.msrb.mxu2 %v1922_v62 }
 0x93e   :  { %1190 = vmatpush.msrb.mxu2 %v1924_v63 }
 0x9be   :  { %v461_v5 = vpop.f32.mrf.mxu2 }
 0x9bf   :  { %v464_v35 = vadd.f32 %v461_v5, %v1906_v34 }
 0x9c1   :  { %1567 = vtanh.f32 %v464_v35  ;;  %v1488_v6 = vmul.f32 -1.442695, %v464_v35 }
 0x9c3   :  { %1569 = vpow2.f32 %v1488_v6 }
 0x9c7   :  { %v1568_v36 = vpop.eup %1567 }
 0x9c8   :  { %490 = vrot.lane.b32.xlu1 %v1568_v36, %s1720_s15 }
 0x9c9   :  { %v1570_v37 = vpop.eup %1569 }
 0x9ca   :  { %v468_v38 = vadd.f32 1.0, %v1570_v37 }
 0x9cc   :  { %1571 = vrcp.f32 %v468_v38  ;;  %v480_v23 = vand.u32 2147483648, %v468_v38  ;;  %vm474_vm2 = vweird.f32 %v468_v38  ;;  %v478_v44 = vand.u32 2147483647, %v468_v38 }
 0x9ce   :  { %v481_v46 = vor.u32 1.1754944e-38, %v480_v23  ;;  %vm479_vm4 = vcmp.eq.f32.partialorder %v478_v44, 8.507059e+37 }
 0x9d2   :  { %v1572_v39 = vpop.eup %1571 }
 0x9d3   :  { %v470_v40 = vmul.f32 %v1572_v39, %v468_v38  ;;  %vm475_vm1 = vweird.f32 %v1572_v39 }
 0x9d4   :  { %vm476_vm3 = vmor %vm474_vm2, %vm475_vm1  ;;  %vm763_vm1 = vcmask 130048  }
 0x9d5   :  { %v471_v41 = vsub.f32 1.0, %v470_v40 }
 0x9d7   :  { %v472_v42 = vmul.f32 %v1572_v39, %v471_v41 }
 0x9d9   :  { %v473_v43 = vadd.f32 %v1572_v39, %v472_v42 }
 0x9db   :  { %v477_v45 = vsel %vm476_vm3, %v1572_v39, %v473_v43 }
 0x9dc   :  { %v482_v48 = vsel %vm479_vm4, %v481_v46, %v477_v45 }
 0x9dd   :  { %v488_v56 = vmul.f32 %v486_v55, %v482_v48 }
 0xa3a   :  { %v491_v47 = vpop.permute.xlu1 %490 }
 0xa3b   :  { %v493_v50 = vmul.f32 %v491_v47, %v482_v48 }
 0xa3d   :  { %495 = vrot.lane.b32.xlu2 %v493_v50, %s1721_s3 }
 0xa45   :  { %730 = vrot.lane.b32.xlu2 %v716_v14, %s1721_s3 }
 0xa97   :  { %v496_v49 = vpop.permute.xlu2 %495 }
 0xa98   :  { %v1913_v57 = vadd.f32 %v496_v49, %v488_v56 }
 0xa9a   :  { %1573 = vtanh.f32 %v1913_v57  ;;  %v555_v43 = vrot.slane %v1913_v57, 6 }
 0xa9f   :  { %v731_v58 = vpop.permute.xlu2 %730 }
 0xaa0   :  { %v1574_v59 = vpop.eup %1573  ;;  %1495 = vmatmul.msk.f32.vlgmr.msra.gmra.mxu2 %vm167_vm12, %v731_v58 }
 0xaa1   :  { %501 = vrot.lane.b32.xlu0 %v1574_v59, %s1720_s15 }
 0xb13   :  { %v502_v60 = vpop.permute.xlu0 %501 }
 0xb14   :  { %v1918_v61 = vmul.f32 %v502_v60, %v482_v48 }
 0xb16   :  { %506 = vrot.lane.b32.xlu1 %v1918_v61, %s1721_s3 }
 0xb23   :  { %v755_v4 = vpop.f32.mrf.mxu2 }
 0xb24   :  { %v1947_v7 = vadd.f32 %v1943_v2, %v755_v4 }
 0xb88   :  { %v507_v25 = vpop.permute.xlu1 %506 }
 0xb89   :  { %1489 = vmatmul.msk.f32.vlgmr.msra.gmra.mxu3 %vm167_vm12, %v507_v25 }
 0xb8a   :  { %983 = vmatpush.msra.mxu3 %v1922_v62 }
 0xb8c   :  { %984 = vmatpush.msra.mxu3 %v1924_v63 }
 0xb91   :  { %782 = vmatmul.f32.vlgmr.msrb.gmra.mxu3 %v1719_v21 }
 0xb92   :  { %1259 = vmatpush.msrb.mxu3 %v1922_v62 }
 0xb94   :  { %1260 = vmatpush.msrb.mxu3 %v1924_v63 }
 0xc0c   :  { %v527_v0 = vpop.f32.mrf.mxu3 }
 0xc0d   :  { %v531_v1 = vrot.slane %v527_v0, 6 }
 0xc0f   :  { %v533_v3 = vadd.f32 %v531_v1, %v1906_v34 }
 0xc11   :  { %1575 = vtanh.f32 %v533_v3  ;;  %v1490_v11 = vmul.f32 -1.442695, %v533_v3 }
 0xc14   :  { %v783_v8 = vpop.f32.mrf.mxu3 }
 0xc15   :  { %v786_v21 = vadd.f32 %v783_v8, %v1947_v7 }
 0xc17   :  { %v1576_v9 = vpop.eup %1575  ;;  %1577 = vtanh.f32 %v786_v21  ;;  %v1497_v12 = vmul.f32 -1.442695, %v786_v21 }
 0xc18   :  { %559 = vrot.lane.b32.xlu0 %v1576_v9, %s1720_s15  ;;  %1579 = vpow2.f32 %v1490_v11 }
 0xc19   :  { %1581 = vpow2.f32 %v1497_v12 }
 0xc1d   :  { %v1578_v10 = vpop.eup %1577 }
 0xc1e   :  { %809 = vrot.lane.b32.xlu1 %v1578_v10, %s1722_s18  ;;  %v1580_v13 = vpop.eup %1579 }
 0xc1f   :  { %v537_v14 = vadd.f32 1.0, %v1580_v13  ;;  %v1582_v15 = vpop.eup %1581 }
 0xc20   :  { %v790_v16 = vadd.f32 1.0, %v1582_v15 }
 0xc21   :  { %1583 = vrcp.f32 %v537_v14  ;;  %v549_v28 = vand.u32 2147483648, %v537_v14  ;;  %vm543_vm10 = vweird.f32 %v537_v14  ;;  %v547_v29 = vand.u32 2147483647, %v537_v14 }
 0xc22   :  { %1585 = vrcp.f32 %v790_v16  ;;  %v802_v36 = vand.u32 2147483648, %v790_v16  ;;  %vm796_vm15 = vweird.f32 %v790_v16  ;;  %v800_v37 = vand.u32 2147483647, %v790_v16 }
 0xc23   :  { %v550_v32 = vor.u32 1.1754944e-38, %v549_v28  ;;  %vm548_vm13 = vcmp.eq.f32.partialorder %v547_v29, 8.507059e+37 }
 0xc24   :  { %v803_v39 = vor.u32 1.1754944e-38, %v802_v36  ;;  %vm801_vm9 = vcmp.eq.f32.partialorder %v800_v37, 8.507059e+37 }
 0xc27   :  { %v1584_v17 = vpop.eup %1583 }
 0xc28   :  { %v539_v18 = vmul.f32 %v1584_v17, %v537_v14  ;;  %v1586_v19 = vpop.eup %1585  ;;  %vm544_vm7 = vweird.f32 %v1584_v17 }
 0xc29   :  { %v792_v22 = vmul.f32 %v1586_v19, %v790_v16  ;;  %vm545_vm11 = vmor %vm543_vm10, %vm544_vm7  ;;  %vm797_vm14 = vweird.f32 %v1586_v19 }
 0xc2a   :  { %v540_v20 = vsub.f32 1.0, %v539_v18  ;;  %vm798_vm8 = vmor %vm796_vm15, %vm797_vm14 }
 0xc2b   :  { %v793_v26 = vsub.f32 1.0, %v792_v22 }
 0xc2c   :  { %v541_v24 = vmul.f32 %v1584_v17, %v540_v20 }
 0xc2d   :  { %v794_v30 = vmul.f32 %v1586_v19, %v793_v26 }
 0xc2e   :  { %v542_v27 = vadd.f32 %v1584_v17, %v541_v24 }
 0xc2f   :  { %v795_v33 = vadd.f32 %v1586_v19, %v794_v30 }
 0xc30   :  { %v546_v31 = vsel %vm545_vm11, %v1584_v17, %v542_v27 }
 0xc31   :  { %v551_v35 = vsel %vm548_vm13, %v550_v32, %v546_v31  ;;  %v799_v38 = vsel %vm798_vm8, %v1586_v19, %v795_v33 }
 0xc32   :  { %v804_v41 = vsel %vm801_vm9, %v803_v39, %v799_v38  ;;  %v557_v23 = vmul.f32 %v555_v43, %v551_v35 }
 0xc33   :  { %v807_v47 = vmul.f32 0.0, %v804_v41 }
 0xc8a   :  { %v560_v5 = vpop.permute.xlu0 %559 }
 0xc8b   :  { %v562_v6 = vmul.f32 %v560_v5, %v551_v35 }
 0xc8d   :  { %564 = vrot.lane.b32.xlu2 %v562_v6, %s1721_s3 }
 0xc90   :  { %v810_v40 = vpop.permute.xlu1 %809 }
 0xc91   :  { %v812_v42 = vmul.f32 %v810_v40, %v804_v41 }
 0xc93   :  { %814 = vrot.lane.b32.xlu0 %v812_v42, %s1723_s6 }
 0xce7   :  { %v565_v44 = vpop.permute.xlu2 %564 }
 0xce8   :  { %v1955_v45 = vadd.f32 %v565_v44, %v557_v23 }
 0xcea   :  { %1587 = vtanh.f32 %v1955_v45  ;;  %v625_v39 = vrot.slane %v1955_v45, 6 }
 0xcf0   :  { %v1588_v46 = vpop.eup %1587 }
 0xcf1   :  { %570 = vrot.lane.b32.xlu1 %v1588_v46, %s1720_s15 }
 0xd05   :  { %v815_v48 = vpop.permute.xlu0 %814 }
 0xd06   :  { %v1959_v50 = vadd.f32 %v815_v48, %v807_v47 }
 0xd08   :  { %1589 = vtanh.f32 %v1959_v50  ;;  %v874_v43 = vrot.slane %v1959_v50, 6 }
 0xd0e   :  { %v1590_v51 = vpop.eup %1589 }
 0xd0f   :  { %820 = vrot.lane.b32.xlu2 %v1590_v51, %s1721_s3 }
 0xd63   :  { %v571_v52 = vpop.permute.xlu1 %570 }
 0xd64   :  { %v1963_v53 = vmul.f32 %v571_v52, %v551_v35 }
 0xd66   :  { %v575_v54 = vrot.slane %v1963_v53, 2  ;;  %v717_v52 = vsel %vm116_vm5, %v1918_v61, %v1963_v53 }
 0xd68   :  { %576 = vrot.lane.b32.xlu0 %v575_v54, %s1721_s3 }
 0xd69   :  { %v821_v55 = vpop.permute.xlu2 %820 }
 0xd6a   :  { %v1967_v56 = vmul.f32 %v821_v55, %v804_v41 }
 0xd6c   :  { %825 = vrot.lane.b32.xlu1 %v1967_v56, %s1724_s19 }
 0xdda   :  { %v577_v49 = vpop.permute.xlu0 %576 }
 0xddb   :  { %1491 = vmatmul.msk.f32.vlgmr.msrb.gmra.mxu0 %vm167_vm12, %v577_v49 }
 0xddc   :  { %1053 = vmatpush.msrb.mxu0 %v1922_v62 }
 0xdde   :  { %1054 = vmatpush.msrb.mxu0 %v1924_v63  ;;  %v826_v57 = vpop.permute.xlu1 %825 }
 0xde3   :  { %1498 = vmatmul.msk.f32.vlgmr.msra.gmra.mxu0 %vm763_vm1, %v826_v57 }
 0xe58   :  { %v597_v58 = vpop.f32.mrf.mxu0 }
 0xe59   :  { %v601_v59 = vrot.slane %v597_v58, 4 }
 0xe5b   :  { %v603_v60 = vadd.f32 %v601_v59, %v1906_v34 }
 0xe5d   :  { %1591 = vtanh.f32 %v603_v60  ;;  %v1492_v8 = vmul.f32 -1.442695, %v603_v60 }
 0xe60   :  { %v846_v25 = vpop.f32.mrf.mxu0 }
 0xe61   :  { %v850_v0 = vrot.slane %v846_v25, 6 }
 0xe63   :  { %v1592_v1 = vpop.eup %1591  ;;  %v852_v3 = vadd.f32 %v850_v0, %v1947_v7 }
 0xe64   :  { %629 = vrot.lane.b32.xlu2 %v1592_v1, %s1720_s15 }
 0xe65   :  { %1593 = vtanh.f32 %v852_v3  ;;  %v1499_v13 = vmul.f32 -1.442695, %v852_v3 }
 0xe66   :  { %1595 = vpow2.f32 %v1492_v8 }
 0xe6b   :  { %v1594_v4 = vpop.eup %1593 }
 0xe6c   :  { %878 = vrot.lane.b32.xlu0 %v1594_v4, %s1722_s18  ;;  %v1596_v21 = vpop.eup %1595 }
 0xe6d   :  { %v607_v9 = vadd.f32 1.0, %v1596_v21 }
 0xe6f   :  { %1597 = vrcp.f32 %v607_v9  ;;  %v619_v16 = vand.u32 2147483648, %v607_v9  ;;  %vm613_vm3 = vweird.f32 %v607_v9  ;;  %v617_v17 = vand.u32 2147483647, %v607_v9 }
 0xe70   :  { %1599 = vpow2.f32 %v1499_v13 }
 0xe71   :  { %v620_v20 = vor.u32 1.1754944e-38, %v619_v16  ;;  %vm618_vm7 = vcmp.eq.f32.partialorder %v617_v17, 8.507059e+37 }
 0xe75   :  { %v1598_v10 = vpop.eup %1597 }
 0xe76   :  { %v609_v11 = vmul.f32 %v1598_v10, %v607_v9  ;;  %vm614_vm2 = vweird.f32 %v1598_v10  ;;  %v1600_v18 = vpop.eup %1599 }
 0xe77   :  { %vm615_vm4 = vmor %vm613_vm3, %vm614_vm2  ;;  %v856_v22 = vadd.f32 1.0, %v1600_v18 }
 0xe78   :  { %v610_v12 = vsub.f32 1.0, %v609_v11 }
 0xe79   :  { %1601 = vrcp.f32 %v856_v22  ;;  %v868_v33 = vand.u32 2147483648, %v856_v22  ;;  %vm862_vm11 = vweird.f32 %v856_v22  ;;  %v866_v5 = vand.u32 2147483647, %v856_v22 }
 0xe7a   :  { %v611_v14 = vmul.f32 %v1598_v10, %v610_v12 }
 0xe7b   :  { %v869_v36 = vor.u32 1.1754944e-38, %v868_v33  ;;  %vm867_vm14 = vcmp.eq.f32.partialorder %v866_v5, 8.507059e+37 }
 0xe7c   :  { %v612_v15 = vadd.f32 %v1598_v10, %v611_v14 }
 0xe7e   :  { %v616_v19 = vsel %vm615_vm4, %v1598_v10, %v612_v15 }
 0xe7f   :  { %v621_v26 = vsel %vm618_vm7, %v620_v20, %v616_v19  ;;  %v1602_v28 = vpop.eup %1601 }
 0xe80   :  { %v858_v29 = vmul.f32 %v1602_v28, %v856_v22  ;;  %vm863_vm10 = vweird.f32 %v1602_v28  ;;  %v627_v40 = vmul.f32 %v625_v39, %v621_v26 }
 0xe81   :  { %vm864_vm13 = vmor %vm862_vm11, %vm863_vm10 }
 0xe82   :  { %v859_v30 = vsub.f32 1.0, %v858_v29 }
 0xe84   :  { %v860_v31 = vmul.f32 %v1602_v28, %v859_v30 }
 0xe86   :  { %v861_v32 = vadd.f32 %v1602_v28, %v860_v31 }
 0xe88   :  { %v865_v35 = vsel %vm864_vm13, %v1602_v28, %v861_v32 }
 0xe89   :  { %v870_v37 = vsel %vm867_vm14, %v869_v36, %v865_v35 }
 0xe8a   :  { %v876_v23 = vmul.f32 %v874_v43, %v870_v37 }
 0xebe   :  { %v630_v24 = vpop.permute.xlu2 %629 }
 0xebf   :  { %v632_v27 = vmul.f32 %v630_v24, %v621_v26 }
 0xec1   :  { %634 = vrot.lane.b32.xlu1 %v632_v27, %s1721_s3 }
 0xede   :  { %v879_v6 = vpop.permute.xlu0 %878 }
 0xedf   :  { %v881_v38 = vmul.f32 %v879_v6, %v870_v37 }
 0xee1   :  { %883 = vrot.lane.b32.xlu2 %v881_v38, %s1723_s6 }
 0xf33   :  { %v635_v41 = vpop.permute.xlu1 %634 }
 0xf34   :  { %v1982_v42 = vadd.f32 %v635_v41, %v627_v40 }
 0xf36   :  { %1603 = vtanh.f32 %v1982_v42 }
 0xf3b   :  { %v884_v44 = vpop.permute.xlu2 %883 }
 0xf3c   :  { %v1604_v46 = vpop.eup %1603  ;;  %v886_v47 = vadd.f32 %v884_v44, %v876_v23 }
 0xf3d   :  { %640 = vrot.lane.b32.xlu0 %v1604_v46, %s1720_s15 }
 0xf3e   :  { %1605 = vtanh.f32 %v886_v47  ;;  %v944_v20 = vrot.slane %v886_v47, 6 }
 0xf44   :  { %v1606_v48 = vpop.eup %1605 }
 0xf45   :  { %889 = vrot.lane.b32.xlu1 %v1606_v48, %s1721_s3 }
 0xfaf   :  { %v641_v51 = vpop.permute.xlu0 %640 }
 0xfb0   :  { %v643_v45 = vmul.f32 %v641_v51, %v621_v26 }
 0xfb2   :  { %v645_v54 = vrot.slane %v643_v45, 4  ;;  %v1992_v55 = vsel %vm118_vm0, %v717_v52, %v643_v45  ;;  %v695_v45 = vrot.slane %v1982_v42, 6 }
 0xfb4   :  { %646 = vrot.lane.b32.xlu2 %v645_v54, %s1721_s3 }
 0xfb7   :  { %v890_v50 = vpop.permute.xlu1 %889 }
 0xfb8   :  { %v892_v49 = vmul.f32 %v890_v50, %v870_v37 }
 0xfba   :  { %v894_v57 = vrot.slane %v892_v49, 2  ;;  %v1309_v36 = vsel %vm116_vm5, %v1967_v56, %v892_v49 }
 0xfbc   :  { %895 = vrot.lane.b32.xlu0 %v894_v57, %s1724_s19 }
0x100e   :  { %v647_v58 = vpop.permute.xlu2 %646 }
0x100f   :  { %1493 = vmatmul.msk.f32.vlgmr.msrb.gmra.mxu1 %vm167_vm12, %v647_v58 }
0x1010   :  { %1119 = vmatpush.msrb.mxu1 %v1922_v62 }
0x1012   :  { %1120 = vmatpush.msrb.mxu1 %v1924_v63 }
0x102e   :  { %v896_v59 = vpop.permute.xlu0 %895 }
0x102f   :  { %1500 = vmatmul.msk.f32.vlgmr.msra.gmra.mxu1 %vm763_vm1, %v896_v59 }
0x108c   :  { %v667_v61 = vpop.f32.mrf.mxu1 }
0x108d   :  { %v671_v12 = vrot.slane %v667_v61, 2 }
0x108f   :  { %v673_v15 = vadd.f32 %v671_v12, %v1906_v34 }
0x1091   :  { %v1494_v34 = vmul.f32 -1.442695, %v673_v15 }
0x10ac   :  { %v916_v53 = vpop.f32.mrf.mxu1 }
0x10ad   :  { %v920_v60 = vrot.slane %v916_v53, 4 }
0x10af   :  { %v922_v25 = vadd.f32 %v920_v60, %v1947_v7 }
0x10b1   :  { %1607 = vtanh.f32 %v922_v25  ;;  %v1501_v1 = vmul.f32 -1.442695, %v922_v25 }
0x10b3   :  { %1609 = vpow2.f32 %v1501_v1 }
0x10b7   :  { %v1608_v0 = vpop.eup %1607 }
0x10b8   :  { %948 = vrot.lane.b32.xlu1 %v1608_v0, %s1722_s18 }
0x10b9   :  { %v1610_v3 = vpop.eup %1609 }
0x10ba   :  { %v926_v4 = vadd.f32 1.0, %v1610_v3 }
0x10bc   :  { %1611 = vrcp.f32 %v926_v4  ;;  %v938_v10 = vand.u32 2147483648, %v926_v4  ;;  %vm932_vm8 = vweird.f32 %v926_v4  ;;  %v936_v11 = vand.u32 2147483647, %v926_v4 }
0x10bd   :  { %1613 = vtanh.f32 %v673_v15 }
0x10be   :  { %v939_v14 = vor.u32 1.1754944e-38, %v938_v10  ;;  %vm937_vm2 = vcmp.eq.f32.partialorder %v936_v11, 8.507059e+37 }
0x10c2   :  { %v1612_v62 = vpop.eup %1611 }
0x10c3   :  { %v928_v8 = vmul.f32 %v1612_v62, %v926_v4  ;;  %vm933_vm15 = vweird.f32 %v1612_v62  ;;  %v1614_v19 = vpop.eup %1613 }
0x10c4   :  { %vm934_vm9 = vmor %vm932_vm8, %vm933_vm15 }
0x10c5   :  { %v929_v63 = vsub.f32 1.0, %v928_v8 }
0x10c7   :  { %v930_v21 = vmul.f32 %v1612_v62, %v929_v63 }
0x10c9   :  { %v931_v9 = vadd.f32 %v1612_v62, %v930_v21 }
0x10cb   :  { %v935_v13 = vsel %vm934_vm9, %v1612_v62, %v931_v9 }
0x10cc   :  { %v940_v17 = vsel %vm937_vm2, %v939_v14, %v935_v13 }
0x10cd   :  { %v946_v22 = vmul.f32 %v944_v20, %v940_v17 }
0x112a   :  { %v949_v16 = vpop.permute.xlu1 %948 }
0x112b   :  { %v951_v18 = vmul.f32 %v949_v16, %v940_v17 }
0x112d   :  { %953 = vrot.lane.b32.xlu2 %v951_v18, %s1723_s6 }
0x1135   :  { %699 = vrot.lane.b32.xlu2 %v1614_v19, %s1720_s15 }
0x1187   :  { %v954_v24 = vpop.permute.xlu2 %953 }
0x1188   :  { %v2005_v26 = vadd.f32 %v954_v24, %v946_v22 }
0x118a   :  { %1615 = vtanh.f32 %v2005_v26  ;;  %v1014_v11 = vrot.slane %v2005_v26, 6 }
0x118b   :  { %1617 = vpow2.f32 %v1494_v34 }
0x118f   :  { %v700_v23 = vpop.permute.xlu2 %699 }
0x1190   :  { %v1616_v27 = vpop.eup %1615 }
0x1191   :  { %959 = vrot.lane.b32.xlu0 %v1616_v27, %s1721_s3  ;;  %v1618_v28 = vpop.eup %1617 }
0x1192   :  { %v677_v29 = vadd.f32 1.0, %v1618_v28 }
0x1194   :  { %1619 = vrcp.f32 %v677_v29  ;;  %v689_v39 = vand.u32 2147483648, %v677_v29  ;;  %vm683_vm4 = vweird.f32 %v677_v29  ;;  %v687_v40 = vand.u32 2147483647, %v677_v29 }
0x1196   :  { %v690_v43 = vor.u32 1.1754944e-38, %v689_v39  ;;  %vm688_vm10 = vcmp.eq.f32.partialorder %v687_v40, 8.507059e+37 }
0x119a   :  { %v1620_v30 = vpop.eup %1619 }
0x119b   :  { %v679_v31 = vmul.f32 %v1620_v30, %v677_v29  ;;  %vm684_vm3 = vweird.f32 %v1620_v30 }
0x119c   :  { %vm685_vm7 = vmor %vm683_vm4, %vm684_vm3 }
0x119d   :  { %v680_v32 = vsub.f32 1.0, %v679_v31 }
0x119f   :  { %v681_v33 = vmul.f32 %v1620_v30, %v680_v32 }
0x11a1   :  { %v682_v6 = vadd.f32 %v1620_v30, %v681_v33 }
0x11a3   :  { %v686_v41 = vsel %vm685_vm7, %v1620_v30, %v682_v6 }
0x11a4   :  { %v691_v44 = vsel %vm688_vm10, %v690_v43, %v686_v41 }
0x11a5   :  { %v702_v46 = vmul.f32 %v700_v23, %v691_v44  ;;  %v697_v54 = vmul.f32 %v695_v45, %v691_v44 }
0x1203   :  { %v960_v5 = vpop.permute.xlu0 %959 }
0x1204   :  { %v962_v35 = vmul.f32 %v960_v5, %v940_v17 }
0x1206   :  { %v964_v37 = vrot.slane %v962_v35, 4  ;;  %v2012_v38 = vsel %vm118_vm0, %v1309_v36, %v962_v35 }
0x1208   :  { %965 = vrot.lane.b32.xlu1 %v964_v37, %s1724_s19 }
0x1210   :  { %704 = vrot.lane.b32.xlu1 %v702_v46, %s1721_s3 }
0x127a   :  { %v966_v56 = vpop.permute.xlu1 %965 }
0x127b   :  { %1502 = vmatmul.msk.f32.vlgmr.msra.gmra.mxu3 %vm763_vm1, %v966_v56 }
0x1282   :  { %v705_v52 = vpop.permute.xlu1 %704 }
0x1283   :  { %v707_v50 = vadd.f32 %v705_v52, %v697_v54 }
0x12fe   :  { %v986_v47 = vpop.f32.mrf.mxu3 }
0x12ff   :  { %v990_v48 = vrot.slane %v986_v47, 2 }
0x1301   :  { %v992_v51 = vadd.f32 %v990_v48, %v1947_v7 }
0x1303   :  { %1621 = vtanh.f32 %v992_v51  ;;  %v1503_v58 = vmul.f32 -1.442695, %v992_v51 }
0x1304   :  { %1623 = vtanh.f32 %v707_v50 }
0x1305   :  { %1625 = vpow2.f32 %v1503_v58 }
0x1309   :  { %v1622_v49 = vpop.eup %1621 }
0x130a   :  { %1018 = vrot.lane.b32.xlu0 %v1622_v49, %s1722_s18  ;;  %v1624_v57 = vpop.eup %1623 }
0x130b   :  { %v1626_v59 = vpop.eup %1625 }
0x130c   :  { %v996_v61 = vadd.f32 1.0, %v1626_v59 }
0x130e   :  { %1627 = vrcp.f32 %v996_v61  ;;  %v1008_v0 = vand.u32 2147483648, %v996_v61  ;;  %vm1002_vm13 = vweird.f32 %v996_v61  ;;  %v1006_v1 = vand.u32 2147483647, %v996_v61 }
0x1310   :  { %v1009_v4 = vor.u32 1.1754944e-38, %v1008_v0  ;;  %vm1007_vm15 = vcmp.eq.f32.partialorder %v1006_v1, 8.507059e+37 }
0x1312   :  { %710 = vrot.lane.b32.xlu0 %v1624_v57, %s1720_s15 }
0x1314   :  { %v1628_v53 = vpop.eup %1627 }
0x1315   :  { %v998_v7 = vmul.f32 %v1628_v53, %v996_v61  ;;  %vm1003_vm11 = vweird.f32 %v1628_v53 }
0x1316   :  { %vm1004_vm14 = vmor %vm1002_vm13, %vm1003_vm11 }
0x1317   :  { %v999_v60 = vsub.f32 1.0, %v998_v7 }
0x1319   :  { %v1000_v42 = vmul.f32 %v1628_v53, %v999_v60 }
0x131b   :  { %v1001_v25 = vadd.f32 %v1628_v53, %v1000_v42 }
0x131d   :  { %v1005_v3 = vsel %vm1004_vm14, %v1628_v53, %v1001_v25 }
0x131e   :  { %v1010_v8 = vsel %vm1007_vm15, %v1009_v4, %v1005_v3 }
0x131f   :  { %v1016_v12 = vmul.f32 %v1014_v11, %v1010_v8 }
0x137c   :  { %v1019_v62 = vpop.permute.xlu0 %1018 }
0x137d   :  { %v1021_v63 = vmul.f32 %v1019_v62, %v1010_v8 }
0x137f   :  { %1023 = vrot.lane.b32.xlu2 %v1021_v63, %s1723_s6 }
0x1384   :  { %v711_v21 = vpop.permute.xlu0 %710 }
0x1385   :  { %v713_v9 = vmul.f32 %v711_v21, %v691_v44 }
0x1387   :  { %v719_v10 = vsel %vm120_vm6, %v1992_v55, %v713_v9 }
0x1388   :  { %732 = vrot.lane.b32.xlu2 %v719_v10, %s1721_s3 }
0x13d9   :  { %v1024_v13 = vpop.permute.xlu2 %1023 }
0x13da   :  { %v1026_v14 = vadd.f32 %v1024_v13, %v1016_v12 }
0x13dc   :  { %1629 = vtanh.f32 %v1026_v14  ;;  %v1081_v41 = vrot.slane %v1026_v14, 6 }
0x13e2   :  { %v1630_v15 = vpop.eup %1629  ;;  %v733_v16 = vpop.permute.xlu2 %732 }
0x13e3   :  { %1029 = vrot.lane.b32.xlu1 %v1630_v15, %s1721_s3  ;;  %1496 = vmatmul.msk.f32.gmra.mxu2 %vm167_vm12, %v733_v16 }
0x1455   :  { %v1030_v17 = vpop.permute.xlu1 %1029 }
0x1456   :  { %v1032_v18 = vmul.f32 %v1030_v17, %v1010_v8 }
0x1458   :  { %v1034_v19 = vrot.slane %v1032_v18, 6  ;;  %v2030_v55 = vsel %vm120_vm6, %v2012_v38, %v1032_v18 }
0x145a   :  { %1035 = vrot.lane.b32.xlu0 %v1034_v19, %s1724_s19 }
0x1466   :  { %v758_v22 = vpop.f32.mrf.mxu2 }
0x1467   :  { %v2035_v24 = vadd.f32 %v1943_v2, %v758_v22 }
0x14cc   :  { %v1036_v20 = vpop.permute.xlu0 %1035 }
0x14cd   :  { %1504 = vmatmul.msk.f32.vlgmr.msrb.gmra.mxu0 %vm763_vm1, %v1036_v20 }
0x154a   :  { %v1056_v26 = vpop.f32.mrf.mxu0 }
0x154b   :  { %v1059_v27 = vadd.f32 %v1056_v26, %v2035_v24 }
0x154d   :  { %1631 = vtanh.f32 %v1059_v27  ;;  %v1505_v28 = vmul.f32 -1.442695, %v1059_v27 }
0x154f   :  { %1633 = vpow2.f32 %v1505_v28 }
0x1553   :  { %v1632_v34 = vpop.eup %1631 }
0x1554   :  { %1085 = vrot.lane.b32.xlu1 %v1632_v34, %s1722_s18 }
0x1555   :  { %v1634_v29 = vpop.eup %1633 }
0x1556   :  { %v1063_v30 = vadd.f32 1.0, %v1634_v29 }
0x1558   :  { %1635 = vrcp.f32 %v1063_v30  ;;  %v1075_v2 = vand.u32 2147483648, %v1063_v30  ;;  %vm1069_vm8 = vweird.f32 %v1063_v30  ;;  %v1073_v36 = vand.u32 2147483647, %v1063_v30 }
0x155a   :  { %v1076_v37 = vor.u32 1.1754944e-38, %v1075_v2  ;;  %vm1074_vm2 = vcmp.eq.f32.partialorder %v1073_v36, 8.507059e+37 }
0x155e   :  { %v1636_v31 = vpop.eup %1635 }
0x155f   :  { %v1065_v32 = vmul.f32 %v1636_v31, %v1063_v30  ;;  %vm1070_vm12 = vweird.f32 %v1636_v31 }
0x1560   :  { %vm1071_vm9 = vmor %vm1069_vm8, %vm1070_vm12 }
0x1561   :  { %v1066_v33 = vsub.f32 1.0, %v1065_v32 }
0x1563   :  { %v1067_v5 = vmul.f32 %v1636_v31, %v1066_v33 }
0x1565   :  { %v1068_v35 = vadd.f32 %v1636_v31, %v1067_v5 }
0x1567   :  { %v1072_v6 = vsel %vm1071_vm9, %v1636_v31, %v1068_v35 }
0x1568   :  { %v1077_v39 = vsel %vm1074_vm2, %v1076_v37, %v1072_v6 }
0x1569   :  { %v1083_v43 = vmul.f32 %v1081_v41, %v1077_v39 }
0x15c6   :  { %v1086_v38 = vpop.permute.xlu1 %1085 }
0x15c7   :  { %v1088_v40 = vmul.f32 %v1086_v38, %v1077_v39 }
0x15c9   :  { %1090 = vrot.lane.b32.xlu2 %v1088_v40, %s1723_s6 }
0x1623   :  { %v1091_v23 = vpop.permute.xlu2 %1090 }
0x1624   :  { %v1093_v44 = vadd.f32 %v1091_v23, %v1083_v43 }
0x1626   :  { %1637 = vtanh.f32 %v1093_v44  ;;  %v1150_v62 = vrot.slane %v1093_v44, 6 }
0x162c   :  { %v1638_v46 = vpop.eup %1637 }
0x162d   :  { %1096 = vrot.lane.b32.xlu0 %v1638_v46, %s1721_s3 }
0x169f   :  { %v1097_v56 = vpop.permute.xlu0 %1096 }
0x16a0   :  { %v2041_v47 = vmul.f32 %v1097_v56, %v1077_v39 }
0x16a2   :  { %1101 = vrot.lane.b32.xlu1 %v2041_v47, %s1724_s19 }
0x1714   :  { %v1102_v48 = vpop.permute.xlu1 %1101 }
0x1715   :  { %1506 = vmatmul.msk.f32.vlgmr.msrb.gmra.mxu1 %vm763_vm1, %v1102_v48 }
0x1792   :  { %v1122_v51 = vpop.f32.mrf.mxu1 }
0x1793   :  { %v1126_v45 = vrot.slane %v1122_v51, 6 }
0x1795   :  { %v1128_v52 = vadd.f32 %v1126_v45, %v2035_v24 }
0x1797   :  { %1639 = vtanh.f32 %v1128_v52  ;;  %v1507_v50 = vmul.f32 -1.442695, %v1128_v52 }
0x1799   :  { %1641 = vpow2.f32 %v1507_v50  ;;  %v1315_v50 = vld [vmem:[%s2113_s7] sm:$0xff] }
0x179d   :  { %v1640_v54 = vpop.eup %1639 }
0x179e   :  { %1154 = vrot.lane.b32.xlu2 %v1640_v54, %s1722_s18  ;;  %v1316_v54 = vld [vmem:[%s2113_s7 + $0x8] sm:$0xff] }
0x179f   :  { %v1642_v49 = vpop.eup %1641  ;;  %1345 = vmatpush.msra.mxu0 %v1316_v54 }
0x17a0   :  { %v1132_v57 = vadd.f32 1.0, %v1642_v49 }
0x17a1   :  { %1346 = vmatpush.msra.mxu0 %v1315_v50 }
0x17a2   :  { %1643 = vrcp.f32 %v1132_v57  ;;  %v1144_v60 = vand.u32 2147483648, %v1132_v57  ;;  %vm1138_vm4 = vweird.f32 %v1132_v57  ;;  %v1142_v42 = vand.u32 2147483647, %v1132_v57 }
0x17a4   :  { %v1145_v0 = vor.u32 1.1754944e-38, %v1144_v60  ;;  %vm1143_vm10 = vcmp.eq.f32.partialorder %v1142_v42, 8.507059e+37 }
0x17a8   :  { %v1644_v58 = vpop.eup %1643 }
0x17a9   :  { %v1134_v59 = vmul.f32 %v1644_v58, %v1132_v57  ;;  %vm1139_vm3 = vweird.f32 %v1644_v58 }
0x17aa   :  { %vm1140_vm7 = vmor %vm1138_vm4, %vm1139_vm3  ;;  %vm1361_vm3 = vcmask 64512   ;;  %vm1405_vm4 = vcmask 1042432  }
0x17ab   :  { %v1135_v61 = vsub.f32 1.0, %v1134_v59 }
0x17ad   :  { %v1136_v53 = vmul.f32 %v1644_v58, %v1135_v61 }
0x17af   :  { %v1137_v7 = vadd.f32 %v1644_v58, %v1136_v53 }
0x17b1   :  { %v1141_v25 = vsel %vm1140_vm7, %v1644_v58, %v1137_v7  ;;  %vm1398_vm7 = vcmask 23552  }
0x17b2   :  { %v1146_v3 = vsel %vm1143_vm10, %v1145_v0, %v1141_v25  ;;  %vm1448_vm10 = vcmask 1040384  }
0x17b3   :  { %v1152_v8 = vmul.f32 %v1150_v62, %v1146_v3 }
0x17f8   :  { %v1155_v1 = vpop.permute.xlu2 %1154 }
0x17f9   :  { %v1157_v4 = vmul.f32 %v1155_v1, %v1146_v3 }
0x17fb   :  { %1159 = vrot.lane.b32.xlu0 %v1157_v4, %s1723_s6 }
0x186d   :  { %v1160_v63 = vpop.permute.xlu0 %1159 }
0x186e   :  { %v1162_v21 = vadd.f32 %v1160_v63, %v1152_v8  ;;  %v1356_v63 = vld [vmem:[%s2115_s9] sm:$0xff] }
0x186f   :  { %1383 = vmatpush.msra.mxu1 %v1356_v63 }
0x1870   :  { %1645 = vtanh.f32 %v1162_v21  ;;  %v1220_v2 = vrot.slane %v1162_v21, 6  ;;  %v1532_v21 = vld [vmem:[%s2114_s8] ss:$0 sm:$0xff] }
0x1876   :  { %v1646_v9 = vpop.eup %1645 }
0x1877   :  { %1165 = vrot.lane.b32.xlu1 %v1646_v9, %s1721_s3 }
0x18e9   :  { %v1166_v10 = vpop.permute.xlu1 %1165 }
0x18ea   :  { %v1168_v11 = vmul.f32 %v1166_v10, %v1146_v3 }
0x18ec   :  { %v1170_v12 = vrot.slane %v1168_v11, 2  ;;  %v1312_v41 = vsel %vm116_vm5, %v2041_v47, %v1168_v11 }
0x18ee   :  { %1171 = vrot.lane.b32.xlu2 %v1170_v12, %s1724_s19 }
0x1948   :  { %v1172_v13 = vpop.permute.xlu2 %1171 }
0x1949   :  { %1508 = vmatmul.msk.f32.vlgmr.msrb.gmra.mxu2 %vm763_vm1, %v1172_v13 }
0x19cc   :  { %v1192_v14 = vpop.f32.mrf.mxu2 }
0x19cd   :  { %v1196_v15 = vrot.slane %v1192_v14, 4 }
0x19cf   :  { %v1198_v16 = vadd.f32 %v1196_v15, %v2035_v24  ;;  %v1393_v15 = vld [vmem:[%s2117_s11] sm:$0x7] }
0x19d0   :  { %1516 = vmatpush.msk.msra.mxu2 %vm1405_vm4, %v1393_v15 }
0x19d1   :  { %1647 = vtanh.f32 %v1198_v16  ;;  %v1509_v18 = vmul.f32 -1.442695, %v1198_v16  ;;  %v1533_v16 = vld [vmem:[%s2116_s10] ss:$0 sm:$0xff] }
0x19d3   :  { %1649 = vpow2.f32 %v1509_v18 }
0x19d7   :  { %v1648_v17 = vpop.eup %1647 }
0x19d8   :  { %1224 = vrot.lane.b32.xlu0 %v1648_v17, %s1722_s18 }
0x19d9   :  { %v1650_v19 = vpop.eup %1649 }
0x19da   :  { %v1202_v20 = vadd.f32 1.0, %v1650_v19 }
0x19dc   :  { %1651 = vrcp.f32 %v1202_v20  ;;  %v1214_v29 = vand.u32 2147483648, %v1202_v20  ;;  %vm1208_vm13 = vweird.f32 %v1202_v20  ;;  %v1212_v30 = vand.u32 2147483647, %v1202_v20 }
0x19de   :  { %v1215_v32 = vor.u32 1.1754944e-38, %v1214_v29  ;;  %vm1213_vm15 = vcmp.eq.f32.partialorder %v1212_v30, 8.507059e+37  ;;  %v1534_v30 = vld [vmem:[#allocation2] ss:$0 sm:$0xff] }
0x19e2   :  { %v1652_v22 = vpop.eup %1651 }
0x19e3   :  { %v1204_v26 = vmul.f32 %v1652_v22, %v1202_v20  ;;  %vm1209_vm11 = vweird.f32 %v1652_v22 }
0x19e4   :  { %vm1210_vm14 = vmor %vm1208_vm13, %vm1209_vm11  ;;  %vm1456_vm11 = vcmask 1046528   ;;  %vm1458_vm13 = vcmask 7168  }
0x19e5   :  { %v1205_v27 = vsub.f32 1.0, %v1204_v26 }
0x19e7   :  { %v1206_v34 = vmul.f32 %v1652_v22, %v1205_v27 }
0x19e9   :  { %v1207_v28 = vadd.f32 %v1652_v22, %v1206_v34 }
0x19eb   :  { %v1211_v31 = vsel %vm1210_vm14, %v1652_v22, %v1207_v28 }
0x19ec   :  { %v1216_v5 = vsel %vm1213_vm15, %v1215_v32, %v1211_v31 }
0x19ed   :  { %v1222_v36 = vmul.f32 %v1220_v2, %v1216_v5 }
0x1a4a   :  { %v1225_v33 = vpop.permute.xlu0 %1224 }
0x1a4b   :  { %v1227_v35 = vmul.f32 %v1225_v33, %v1216_v5 }
0x1a4d   :  { %1229 = vrot.lane.b32.xlu1 %v1227_v35, %s1723_s6 }
0x1abf   :  { %v1230_v6 = vpop.permute.xlu1 %1229 }
0x1ac0   :  { %v1232_v37 = vadd.f32 %v1230_v6, %v1222_v36 }
0x1ac2   :  { %1653 = vtanh.f32 %v1232_v37  ;;  %v1290_v1 = vrot.slane %v1232_v37, 6 }
0x1ac8   :  { %v1654_v38 = vpop.eup %1653 }
0x1ac9   :  { %1235 = vrot.lane.b32.xlu2 %v1654_v38, %s1721_s3 }
0x1b23   :  { %v1236_v39 = vpop.permute.xlu2 %1235 }
0x1b24   :  { %v1238_v40 = vmul.f32 %v1236_v39, %v1216_v5 }
0x1b26   :  { %v1240_v43 = vrot.slane %v1238_v40, 4  ;;  %v1313_v23 = vsel %vm118_vm0, %v1312_v41, %v1238_v40 }
0x1b28   :  { %1241 = vrot.lane.b32.xlu0 %v1240_v43, %s1724_s19 }
0x1b9a   :  { %v1242_v44 = vpop.permute.xlu0 %1241 }
0x1b9b   :  { %1510 = vmatmul.msk.f32.vlgmr.msrb.gmra.mxu3 %vm763_vm1, %v1242_v44 }
0x1c1e   :  { %v1262_v46 = vpop.f32.mrf.mxu3 }
0x1c1f   :  { %v1266_v56 = vrot.slane %v1262_v46, 2 }
0x1c21   :  { %v1268_v48 = vadd.f32 %v1266_v56, %v2035_v24 }
0x1c23   :  { %1655 = vtanh.f32 %v1268_v48  ;;  %v1511_v47 = vmul.f32 -1.442695, %v1268_v48 }
0x1c25   :  { %1657 = vpow2.f32 %v1511_v47 }
0x1c29   :  { %v1656_v51 = vpop.eup %1655 }
0x1c2a   :  { %1294 = vrot.lane.b32.xlu1 %v1656_v51, %s1722_s18 }
0x1c2b   :  { %v1658_v45 = vpop.eup %1657 }
0x1c2c   :  { %v1272_v52 = vadd.f32 1.0, %v1658_v45 }
0x1c2e   :  { %1659 = vrcp.f32 %v1272_v52  ;;  %v1284_v59 = vand.u32 2147483648, %v1272_v52  ;;  %vm1278_vm8 = vweird.f32 %v1272_v52  ;;  %v1282_v61 = vand.u32 2147483647, %v1272_v52 }
0x1c30   :  { %v1285_v7 = vor.u32 1.1754944e-38, %v1284_v59  ;;  %vm1283_vm2 = vcmp.eq.f32.partialorder %v1282_v61, 8.507059e+37 }
0x1c32   :  { %1323 = vrot.lane.b32.xlu1 %v2030_v55, %s1724_s19 }
0x1c34   :  { %v1660_v24 = vpop.eup %1659 }
0x1c35   :  { %v1274_v49 = vmul.f32 %v1660_v24, %v1272_v52  ;;  %vm1279_vm12 = vweird.f32 %v1660_v24 }
0x1c36   :  { %vm1280_vm9 = vmor %vm1278_vm8, %vm1279_vm12 }
0x1c37   :  { %v1275_v57 = vsub.f32 1.0, %v1274_v49 }
0x1c39   :  { %v1276_v58 = vmul.f32 %v1660_v24, %v1275_v57 }
0x1c3b   :  { %v1277_v55 = vadd.f32 %v1660_v24, %v1276_v58 }
0x1c3d   :  { %v1281_v53 = vsel %vm1280_vm9, %v1660_v24, %v1277_v55 }
0x1c3e   :  { %v1286_v42 = vsel %vm1283_vm2, %v1285_v7, %v1281_v53 }
0x1c3f   :  { %v1292_v3 = vmul.f32 %v1290_v1, %v1286_v42 }
0x1c9c   :  { %v1295_v60 = vpop.permute.xlu1 %1294 }
0x1c9d   :  { %v1297_v25 = vmul.f32 %v1295_v60, %v1286_v42 }
0x1c9f   :  { %1299 = vrot.lane.b32.xlu2 %v1297_v25, %s1723_s6 }
0x1ca4   :  { %v1324_v0 = vpop.permute.xlu1 %1323 }
0x1ca5   :  { %1512 = vmatmul.msk.f32.vlgmr.msra.gmra.mxu0 %vm763_vm1, %v1324_v0 }
0x1cf9   :  { %v1300_v4 = vpop.permute.xlu2 %1299 }
0x1cfa   :  { %v1302_v62 = vadd.f32 %v1300_v4, %v1292_v3 }
0x1cfc   :  { %1661 = vtanh.f32 %v1302_v62 }
0x1d02   :  { %v1662_v8 = vpop.eup %1661 }
0x1d03   :  { %1305 = vrot.lane.b32.xlu0 %v1662_v8, %s1721_s3 }
0x1d22   :  { %v1348_v9 = vpop.f32.mrf.mxu0 }
0x1d23   :  { %v1349_v10 = vadd.f32 %v1532_v21, %v1348_v9 }
0x1d25   :  { %v1354_v11 = vmax.f32 %v1349_v10, 0.0 }
0x1d27   :  { %1514 = vmatmul.msk.f32.vlgmr.msra.gmra.mxu1 %vm1361_vm3, %v1354_v11 }
0x1d75   :  { %v1306_v12 = vpop.permute.xlu0 %1305 }
0x1d76   :  { %v1308_v13 = vmul.f32 %v1306_v12, %v1286_v42 }
0x1d78   :  { %v1314_v14 = vsel %vm120_vm6, %v1313_v23, %v1308_v13 }
0x1d79   :  { %1325 = vrot.lane.b32.xlu2 %v1314_v14, %s1724_s19 }
0x1da4   :  { %v1385_v17 = vpop.f32.mrf.mxu1 }
0x1da5   :  { %v1386_v18 = vadd.f32 %v1533_v16, %v1385_v17 }
0x1da7   :  { %v1391_v19 = vmax.f32 %v1386_v18, 0.0 }
0x1da9   :  { %1517 = vmatmul.msk.f32.vlgmr.msra.gmra.mxu2 %vm1398_vm7, %v1391_v19 }
0x1dd3   :  { %v1326_v20 = vpop.permute.xlu2 %1325 }
0x1dd4   :  { %1513 = vmatmul.msk.f32.gmra.mxu0 %vm763_vm1, %v1326_v20  ;;  %vm1453_vm1 = vcmask 1044480  }
0x1e2c   :  { %v1426_v31 = vpop.f32.mrf.mxu2 }
0x1e2d   :  { %v1427_v32 = vadd.f32 %v1534_v30, %v1426_v31 }
0x1e2f   :  { %v1433_v33 = vrot.slane %v1427_v32, 1  ;;  %v1435_v5 = vrot.slane %v1427_v32, 2  ;;  %v1437_v35 = vrot.slane %v1427_v32, 3  ;;  %v1460_v40 = vrot.slane %v1427_v32, 4 }
0x1e31   :  { %v1449_v2 = vsel %vm1448_vm10, %v1427_v32, %v1433_v33  ;;  %v1462_v36 = vsel %vm1448_vm10, %v1433_v33, %v1435_v5 }
0x1e32   :  { %v1450_v37 = vsel %vm116_vm5, %v1449_v2, %v1435_v5  ;;  %v1463_v38 = vsel %vm116_vm5, %v1462_v36, %v1437_v35 }
0x1e33   :  { %v1451_v44 = vsel %vm1405_vm4, %v1450_v37, %v1437_v35  ;;  %v1464_v46 = vsel %vm1405_vm4, %v1463_v38, %v1460_v40 }
0x1e51   :  { %v1351_v22 = vpop.f32.mrf.mxu0 }
0x1e52   :  { %v1352_v26 = vadd.f32 %v1532_v21, %v1351_v22 }
0x1e54   :  { %v1355_v27 = vmax.f32 %v1352_v26, 0.0 }
0x1e56   :  { %1515 = vmatmul.msk.f32.gmra.mxu1 %vm1361_vm3, %v1355_v27 }
0x1ed3   :  { %v1388_v34 = vpop.f32.mrf.mxu1 }
0x1ed4   :  { %v1389_v28 = vadd.f32 %v1533_v16, %v1388_v34 }
0x1ed6   :  { %v1392_v29 = vmax.f32 %v1389_v28, 0.0 }
0x1ed8   :  { %1518 = vmatmul.msk.f32.gmra.mxu2 %vm1398_vm7, %v1392_v29 }
0x1f5b   :  { %v1429_v6 = vpop.f32.mrf.mxu2 }
0x1f5c   :  { %v1430_v39 = vadd.f32 %v1534_v30, %v1429_v6 }
0x1f5e   :  { %v1440_v41 = vrot.slane %v1430_v39, 4  ;;  %v1442_v43 = vrot.slane %v1430_v39, 5  ;;  %v1444_v23 = vrot.slane %v1430_v39, 6  ;;  %v1446_v56 = vrot.slane %v1430_v39, 7 }
0x1f60   :  { %v1452_v48 = vsel %vm118_vm0, %v1451_v44, %v1440_v41  ;;  %v1465_v51 = vsel %vm118_vm0, %v1464_v46, %v1442_v43 }
0x1f61   :  { %v1454_v47 = vsel %vm1453_vm1, %v1452_v48, %v1442_v43  ;;  %v1466_v45 = vsel %vm1453_vm1, %v1465_v51, %v1444_v23 }
0x1f62   :  { %v1455_v52 = vsel %vm120_vm6, %v1454_v47, %v1444_v23  ;;  %v1467_v54 = vsel %vm120_vm6, %v1466_v45, %v1446_v56 }
0x1f63   :  { %v1457_v50 = vsel %vm1456_vm11, %v1455_v52, %v1446_v56  ;;  %v1468_v24 = vsel %vm1456_vm11, %v1467_v54, %v1430_v39 }
0x1f64   :  { %1459 = vst.msk [vmem:[%s2119_s13] sm:$0xff] %vm1458_vm13, %v1457_v50 }
0x1f65   :  { %1519 = vst.msk [vmem:[%s2119_s13 + $0x8] sm:$0xff] %vm1458_vm13, %v1468_v24 }
0x1f66   :  { %1475 = vsyncpa [#allocation4], 1 }
0x1f67   :  { %1476 = vsyncpa [#allocation6], 1 }

</bundles_post_ra>
